<compile_context>
chip_gen: v7x
topology: tpu7x:2x2x1
jax: 0.10.0
libtpu: 0.0.40
codegen_flags: <defaults>
</compile_context>

<pallas_src>
import math
import functools

import jax
import jax.numpy as jnp
from jax import lax
from jax.experimental import pallas as pl
from jax.experimental.pallas import tpu as pltpu


# ----------------------------------------------------------------------------
# Linear:  y = x @ W + b   (M/N/K tiled, bf16 MXU operands, f32 accumulation)
# ----------------------------------------------------------------------------
def _linear_kernel(x_ref, w_ref, b_ref, o_ref, acc_ref):
    @pl.when(pl.program_id(2) == 0)
    def _init():
        acc_ref[...] = jnp.zeros_like(acc_ref)

    acc_ref[...] += jnp.dot(
        x_ref[...].astype(jnp.bfloat16),
        w_ref[...].astype(jnp.bfloat16),
        preferred_element_type=jnp.float32)

    @pl.when(pl.program_id(2) == pl.num_programs(2) - 1)
    def _finalize():
        o_ref[...] = (acc_ref[...] + b_ref[...]).astype(o_ref.dtype)


def _pick_tile(n, max_t=512):
    """Largest multiple of 128 dividing n that is <= max_t (else full n)."""
    cand = [t for t in range(128, min(max_t, n) + 1, 128) if n % t == 0]
    return max(cand) if cand else n


def linear(x2d, w, b, *, tm=256, tn=None, tk=None):
    """y = x2d @ w + b   with x2d: (M, K), w: (K, N), b: (N,)."""
    M, K = x2d.shape
    Kw, N = w.shape
    assert Kw == K
    tn = _pick_tile(N) if tn is None else tn
    tk = (K if K <= 512 else _pick_tile(K)) if tk is None else tk
    assert N % tn == 0 and (tn == N or tn % 128 == 0)
    assert K % tk == 0 and (tk == K or tk % 128 == 0)

    # M tile rounded to a sublane multiple; pad M instead of asserting.
    tm = max(8, min(tm, ((M + 7) // 8) * 8))
    M_pad = ((M + tm - 1) // tm) * tm
    x_p = jnp.pad(x2d, ((0, M_pad - M), (0, 0))) if M_pad != M else x2d
    b2d = b.reshape(1, N)

    out = pl.pallas_call(
        _linear_kernel,
        out_shape=jax.ShapeDtypeStruct((M_pad, N), x2d.dtype),
        grid_spec=pltpu.PrefetchScalarGridSpec(
            num_scalar_prefetch=0,
            grid=(M_pad // tm, N // tn, K // tk),
            in_specs=[
                pl.BlockSpec((tm, tk), lambda i, j, kk: (i, kk)),
                pl.BlockSpec((tk, tn), lambda i, j, kk: (kk, j)),
                pl.BlockSpec((1, tn), lambda i, j, kk: (0, j)),
            ],
            out_specs=pl.BlockSpec((tm, tn), lambda i, j, kk: (i, j)),
            scratch_shapes=[pltpu.VMEM((tm, tn), jnp.float32)],
        ),
        compiler_params=pltpu.CompilerParams(
            dimension_semantics=("parallel", "parallel", "arbitrary")),
    )(x_p, w, b2d)
    return out[:M] if M_pad != M else out


# ----------------------------------------------------------------------------
# Flash-style causal attention over the fused qkv slab, triangular tile grid
# ----------------------------------------------------------------------------
def _flash_attn_kernel(qi_smem, ki_smem, q_ref, k_ref, v_ref, o_ref,
                       m_sc, l_sc, acc_sc, *, n_head):
    # q_ref: (1, tq, C), k_ref/v_ref: (1, tkv, C), o_ref: (1, tq, C)
    t = pl.program_id(1)
    qi = qi_smem[t]
    ki = ki_smem[t]

    tq = q_ref.shape[1]
    tkv = k_ref.shape[1]
    C = q_ref.shape[2]
    D = C // n_head

    @pl.when(ki == 0)
    def _init():
        m_sc[...] = jnp.full_like(m_sc, -jnp.inf)
        l_sc[...] = jnp.zeros_like(l_sc)
        acc_sc[...] = jnp.zeros_like(acc_sc)

    q = q_ref[0]                                      # (tq, C)  f32
    k = k_ref[0]                                      # (tkv, C) f32
    v = v_ref[0]                                      # (tkv, C) f32

    # Causal mask for this tile, computed once and shared by all heads.
    row = qi * tq + lax.broadcasted_iota(jnp.int32, (tq, tkv), 0)
    col = ki * tkv + lax.broadcasted_iota(jnp.int32, (tq, tkv), 1)
    causal = col <= row

    pv_parts = []
    alpha_parts = []
    # Static loop over heads: per-head temporaries (s, p) die inside each
    # iteration; only the (tq, D) / (tq, 1) results are carried to the single
    # full-width accumulator update below.
    for h in range(n_head):
        sl = slice(h * D, (h + 1) * D)
        # bf16 operands on the MXU, f32 accumulation.  The 1/sqrt(D) scale is
        # already folded into the q columns of w_attn / b_attn by the wrapper.
        s = lax.dot_general(
            q[:, sl].astype(jnp.bfloat16), k[:, sl].astype(jnp.bfloat16),
            dimension_numbers=(((1,), (1,)), ((), ())),
            preferred_element_type=jnp.float32)        # (tq, tkv)
        s = jnp.where(causal, s, jnp.float32(-1e30))

        m_prev = m_sc[h]                               # (tq, 1)
        m_new = jnp.maximum(m_prev, jnp.max(s, axis=-1, keepdims=True))
        alpha = jnp.exp(m_prev - m_new)
        p = jnp.exp(s - m_new)
        l_sc[h] = alpha * l_sc[h] + jnp.sum(p, axis=-1, keepdims=True)
        m_sc[h] = m_new

        pv_parts.append(jnp.dot(p.astype(jnp.bfloat16),
                                v[:, sl].astype(jnp.bfloat16),
                                preferred_element_type=jnp.float32))
        alpha_parts.append(alpha)

    # Single lane-dense full-width (tq, C) accumulator update: no 64-lane
    # read-modify-writes at non-128-aligned offsets.
    alpha_full = jnp.concatenate(
        [jnp.broadcast_to(a, (tq, D)) for a in alpha_parts], axis=-1)
    pv_full = jnp.concatenate(pv_parts, axis=-1)
    acc_sc[...] = alpha_full * acc_sc[...] + pv_full

    # Last KV tile for this q tile -> normalize and store once, full-width.
    @pl.when((ki + 1) * tkv >= (qi + 1) * tq)
    def _finalize():
        inv_full = jnp.concatenate(
            [jnp.broadcast_to(1.0 / l_sc[h], (tq, D)) for h in range(n_head)],
            axis=-1)                                   # exact reciprocal, once per q tile
        o_ref[0] = (acc_sc[...] * inv_full).astype(o_ref.dtype)


def causal_attention_fused(qkv, n_head, *, tq=256, tkv=256):
    """qkv: (B, T, 3C) fused projection (q already pre-scaled) -> (B, T, C)."""
    B, T, C3 = qkv.shape
    C = C3 // 3
    assert 3 * C == C3 and C % n_head == 0
    assert C % 128 == 0, "n_embd must be a multiple of 128 for this block layout"
    tq = min(tq, T)          # use tq=tkv=128 on v5e (4x128 MXU / 16 MiB scoped VMEM)
    tkv = min(tkv, T)
    assert T % tq == 0 and T % tkv == 0

    # Enumerate only lower-triangular (q-tile, kv-tile) pairs; the scalar-
    # prefetched index tables drive the BlockSpec index_maps so fully-masked
    # KV tiles are neither fetched nor stepped over.
    nq = T // tq
    qis, kis = [], []
    for qi in range(nq):
        n_kv = ((qi + 1) * tq - 1) // tkv + 1
        for ki in range(n_kv):
            qis.append(qi)
            kis.append(ki)
    qi_arr = jnp.asarray(qis, dtype=jnp.int32)
    ki_arr = jnp.asarray(kis, dtype=jnp.int32)
    nt = len(qis)

    kernel = functools.partial(_flash_attn_kernel, n_head=n_head)

    # Block index 0/1/2 on the last (3C) axis selects the q / k / v slab.
    q_spec = pl.BlockSpec((1, tq, C), lambda b, t, qi, ki: (b, qi[t], 0))
    k_spec = pl.BlockSpec((1, tkv, C), lambda b, t, qi, ki: (b, ki[t], 1))
    v_spec = pl.BlockSpec((1, tkv, C), lambda b, t, qi, ki: (b, ki[t], 2))
    o_spec = pl.BlockSpec((1, tq, C), lambda b, t, qi, ki: (b, qi[t], 0))

    return pl.pallas_call(
        kernel,
        out_shape=jax.ShapeDtypeStruct((B, T, C), qkv.dtype),
        grid_spec=pltpu.PrefetchScalarGridSpec(
            num_scalar_prefetch=2,
            grid=(B, nt),
            in_specs=[q_spec, k_spec, v_spec],
            out_specs=o_spec,
            scratch_shapes=[
                pltpu.VMEM((n_head, tq, 1), jnp.float32),   # running max
                pltpu.VMEM((n_head, tq, 1), jnp.float32),   # running denom
                pltpu.VMEM((tq, C), jnp.float32),           # output accumulator
            ],
        ),
        compiler_params=pltpu.CompilerParams(
            dimension_semantics=("parallel", "arbitrary")),
    )(qi_arr, ki_arr, qkv, qkv, qkv)


# ----------------------------------------------------------------------------
# Module wrapper (mirrors CausalSelfAttention.forward, eval mode)
# ----------------------------------------------------------------------------
def causal_self_attention(x, params, n_head):
    """x: (B, T, C) -> (B, T, C)."""
    B, T, C = x.shape
    scale = 1.0 / math.sqrt(C // n_head)
    # Fold the 1/sqrt(D) softmax scale into the q columns of the fused qkv
    # projection (weight prep), so the attention kernel never rescales q.
    w_attn = jnp.concatenate(
        [params["w_attn"][:, :C] * scale, params["w_attn"][:, C:]], axis=1)
    b_attn = jnp.concatenate(
        [params["b_attn"][:C] * scale, params["b_attn"][C:]], axis=0)

    qkv = linear(x.reshape(B * T, C), w_attn, b_attn)
    qkv = qkv.reshape(B, T, 3 * C)                 # no split / transpose glue
    y = causal_attention_fused(qkv, n_head)        # (B, T, C) directly
    y = linear(y.reshape(B * T, C), params["w_proj"], params["b_proj"])
    return y.reshape(B, T, C)


def reference(x, params, n_head):
    """Pure-JAX f32 reference for correctness check."""
    B, T, C = x.shape
    D = C // n_head
    qkv = x @ params["w_attn"] + params["b_attn"]
    q, k, v = jnp.split(qkv, 3, axis=2)
    q = q.reshape(B, T, n_head, D).transpose(0, 2, 1, 3)
    k = k.reshape(B, T, n_head, D).transpose(0, 2, 1, 3)
    v = v.reshape(B, T, n_head, D).transpose(0, 2, 1, 3)
    s = jnp.einsum("bhqd,bhkd->bhqk", q, k) / math.sqrt(D)
    mask = jnp.tril(jnp.ones((T, T), dtype=bool))
    s = jnp.where(mask, s, -jnp.inf)
    p = jax.nn.softmax(s, axis=-1)
    y = jnp.einsum("bhqk,bhkd->bhqd", p, v)
    y = y.transpose(0, 2, 1, 3).reshape(B, T, C)
    return y @ params["w_proj"] + params["b_proj"]


# ----------------------------------------------------------------------------
# Main
# ----------------------------------------------------------------------------
if __name__ == "__main__":
    # Small config consistent with the module: n_embd=384, n_head=6 (D=64).
    # T=512 exercises the triangular multi-tile path with tq=tkv=256.
    B, T, C, H = 2, 512, 384, 6

    key = jax.random.PRNGKey(0)
    kx, kw1, kb1, kw2, kb2 = jax.random.split(key, 5)

    x = jax.random.normal(kx, (B, T, C), dtype=jnp.float32)

    # Deterministic nn.Linear-style init: U(-1/sqrt(fan_in), 1/sqrt(fan_in)).
    bound = 1.0 / math.sqrt(C)
    params = {
        "w_attn": jax.random.uniform(kw1, (C, 3 * C), jnp.float32, -bound, bound),
        "b_attn": jax.random.uniform(kb1, (3 * C,), jnp.float32, -bound, bound),
        "w_proj": jax.random.uniform(kw2, (C, C), jnp.float32, -bound, bound),
        "b_proj": jax.random.uniform(kb2, (C,), jnp.float32, -bound, bound),
    }

    out = jax.block_until_ready(causal_self_attention(x, params, n_head=H))
    ref = jax.block_until_ready(reference(x, params, n_head=H))

    assert out.shape == (B, T, C)
    max_err = float(jnp.max(jnp.abs(out - ref)))
    # Tolerance accounts for bf16 MXU operands (f32 accumulation) in all three
    # matmul stages plus online-softmax accumulation order.
    assert jnp.allclose(out, ref, atol=3e-2, rtol=3e-2), \
        f"mismatch vs reference (max abs err {max_err})"

    print("KERNEL_OK")
</pallas_src>

<mosaic_0001>
module attributes {stable_mosaic.version = 11 : i64} {
  func.func @_linear_kernel(%arg0: i32, %arg1: i32, %arg2: i32, %arg3: memref<256x384xf32, #tpu.memory_space<vmem>>, %arg4: memref<384x384xf32, #tpu.memory_space<vmem>>, %arg5: memref<1x384xf32, #tpu.memory_space<vmem>>, %arg6: memref<256x384xf32, #tpu.memory_space<vmem>>, %arg7: memref<256x384xf32, #tpu.memory_space<vmem>>) attributes {dimension_semantics = [#tpu.dimension_semantics<parallel>, #tpu.dimension_semantics<parallel>, #tpu.dimension_semantics<arbitrary>], iteration_bounds = array<i64: 4, 3, 1>, scalar_prefetch = 0 : i64, scratch_operands = 1 : i64, tpu.core_type = #tpu.core_type<tc>, window_params = [{transform_indices = @transform_0, window_bounds = array<i64: 256, 384>}, {transform_indices = @transform_1, window_bounds = array<i64: 384, 384>}, {transform_indices = @transform_2, window_bounds = array<i64: 1, 384>}, {transform_indices = @transform_3, window_bounds = array<i64: 256, 384>}]} {
    %c0_i32 = arith.constant 0 : i32
    %0 = arith.cmpi eq, %arg2, %c0_i32 : i32
    %1 = arith.extui %0 : i1 to i32
    %c0_i32_0 = arith.constant 0 : i32
    %2 = arith.cmpi ne, %1, %c0_i32_0 : i32
    scf.if %2 {
      %cst_10 = arith.constant 0.000000e+00 : f32
      %14 = vector.broadcast %cst_10 : f32 to vector<256x384xf32>
      %c0_11 = arith.constant 0 : index
      %c0_12 = arith.constant 0 : index
      %15 = vector.load %arg7[%c0_11, %c0_12] : memref<256x384xf32, #tpu.memory_space<vmem>>, vector<256x384xf32>
      tpu.vector_store %arg7[%c0_11, %c0_12], %14 {strides = array<i32>} : memref<256x384xf32, #tpu.memory_space<vmem>>, vector<256x384xf32>,
    } else {
    }
    %c0 = arith.constant 0 : index
    %c0_1 = arith.constant 0 : index
    %3 = vector.load %arg7[%c0, %c0_1] : memref<256x384xf32, #tpu.memory_space<vmem>>, vector<256x384xf32>
    %c0_2 = arith.constant 0 : index
    %c0_3 = arith.constant 0 : index
    %4 = vector.load %arg3[%c0_2, %c0_3] : memref<256x384xf32, #tpu.memory_space<vmem>>, vector<256x384xf32>
    %5 = arith.truncf %4 : vector<256x384xf32> to vector<256x384xbf16>
    %c0_4 = arith.constant 0 : index
    %c0_5 = arith.constant 0 : index
    %6 = vector.load %arg4[%c0_4, %c0_5] : memref<384x384xf32, #tpu.memory_space<vmem>>, vector<384x384xf32>
    %7 = arith.truncf %6 : vector<384x384xf32> to vector<384x384xbf16>
    %cst = arith.constant dense<0.000000e+00> : vector<256x384xf32>
    %8 = tpu.matmul %5, %7, %cst {dimension_numbers = #tpu.dot_dimension_numbers<[1], [0], [0], [1], [0, 0, 1, 1], [], []>} : vector<256x384xbf16>, vector<384x384xbf16>, vector<256x384xf32> -> vector<256x384xf32>
    %9 = arith.addf %3, %8 : vector<256x384xf32>
    %c0_6 = arith.constant 0 : index
    %c0_7 = arith.constant 0 : index
    %10 = vector.load %arg7[%c0_6, %c0_7] : memref<256x384xf32, #tpu.memory_space<vmem>>, vector<256x384xf32>
    tpu.vector_store %arg7[%c0_6, %c0_7], %9 {strides = array<i32>} : memref<256x384xf32, #tpu.memory_space<vmem>>, vector<256x384xf32>,
    %c0_i32_8 = arith.constant 0 : i32
    %11 = arith.cmpi eq, %arg2, %c0_i32_8 : i32
    %12 = arith.extui %11 : i1 to i32
    %c0_i32_9 = arith.constant 0 : i32
    %13 = arith.cmpi ne, %12, %c0_i32_9 : i32
    scf.if %13 {
      %c0_10 = arith.constant 0 : index
      %c0_11 = arith.constant 0 : index
      %14 = vector.load %arg7[%c0_10, %c0_11] : memref<256x384xf32, #tpu.memory_space<vmem>>, vector<256x384xf32>
      %c0_12 = arith.constant 0 : index
      %c0_13 = arith.constant 0 : index
      %15 = vector.load %arg5[%c0_12, %c0_13] : memref<1x384xf32, #tpu.memory_space<vmem>>, vector<1x384xf32>
      %16 = vector.broadcast %15 : vector<1x384xf32> to vector<256x384xf32>
      %17 = arith.addf %14, %16 : vector<256x384xf32>
      %c0_14 = arith.constant 0 : index
      %c0_15 = arith.constant 0 : index
      %18 = vector.load %arg6[%c0_14, %c0_15] : memref<256x384xf32, #tpu.memory_space<vmem>>, vector<256x384xf32>
      tpu.vector_store %arg6[%c0_14, %c0_15], %17 {strides = array<i32>} : memref<256x384xf32, #tpu.memory_space<vmem>>, vector<256x384xf32>,
    } else {
    }
    return
  }
  func.func @transform_0(%arg0: i32, %arg1: i32, %arg2: i32) -> (i32, i32) {
    %c0_i32 = arith.constant 0 : i32
    return %arg0, %arg2 : i32, i32
  }
  func.func @transform_1(%arg0: i32, %arg1: i32, %arg2: i32) -> (i32, i32) {
    %c0_i32 = arith.constant 0 : i32
    return %arg2, %arg1 : i32, i32
  }
  func.func @transform_2(%arg0: i32, %arg1: i32, %arg2: i32) -> (i32, i32) {
    %c0_i32 = arith.constant 0 : i32
    %c0_i32_0 = arith.constant 0 : i32
    return %c0_i32, %arg1 : i32, i32
  }
  func.func @transform_3(%arg0: i32, %arg1: i32, %arg2: i32) -> (i32, i32) {
    %c0_i32 = arith.constant 0 : i32
    return %arg0, %arg1 : i32, i32
  }
}

</mosaic_0001>

<bundles_post_ra>
// kernel: tpu_custom_call.1
= control target key start
LH: loop header
LB: loop body
LE: loop exit
PB: predicated region body
PF: predicated region fallthrough
CT: control target
= control target key end

     0   :  { %s4043_s0 = inlined_call_operand.hbm [shape: f32[1024,384], index: 0, kind: input, shape index: {}]   ;;  %s4044_s1 = inlined_call_operand.hbm [shape: f32[384,1152], index: 1, kind: input, shape index: {}]   ;;  %s4045_s2 = inlined_call_operand.hbm [shape: f32[1,1152], index: 2, kind: input, shape index: {}]   ;;  %s4046_s3 = inlined_call_operand.hbm [shape: f32[1024,1152], index: 3, kind: output, shape index: {}]  }
   0x1   :  { %4064 = sst [smem:[#allocation22_spill]] %s4043_s0 }
   0x2   :  { %4065 = sst [smem:[#allocation23_spill]] %s4044_s1 }
   0x3   :  { %4066 = sst [smem:[#allocation24_spill]] %s4046_s3 }
   0x4   :  { %8 = vsyncpa [#allocation4], 0 }
   0x5   :  { %10 = vsyncpa [#allocation4 + $0x1], 0 }
   0x6   :  { %11 = vsyncpa [#allocation7], 0 }
   0x7   :  { %13 = vsyncpa [#allocation7 + $0x1], 0 }
   0x8   :  { %14 = vsyncpa [#allocation5], 0 }
   0x9   :  { %16 = vsyncpa [#allocation5 + $0x1], 0  ;;  %s2929_s12 = smov 0   ;;  %s2931_s13 = smov 0  }
   0xa   :  { %s2933_s14 = smov 0   ;;  %s2935_s15 = smov 0  }
   0xb   :  { %s2937_s16 = smov 0   ;;  %s2939_s17 = smov 0  }
   0xc   :  { %s2941_s18 = smov 0   ;;  %s2943_s19 = smov 0  }
   0xd   :  { %s2945_s20 = smov 0   ;;  %s2947_s21 = smov 0  }
   0xe   :  { %s2949_s22 = smov 0   ;;  %s2951_s23 = smov 0  }
   0xf   :  { %s2953_s24 = smov 0   ;;  %s2955_s25 = smov 0  }
  0x10 LB: > { %4067 = sst [smem:[#allocation13_spill]] %s2876_s20  ;;  %s4048_s26 = sadd.s32 1, %s2888_s23  ;;  %s2896_s25 = sphi %s2955_s25, %s22_s25   ;;  %s2892_s24 = sphi %s2953_s24, %s4113_s24   ;;  %s2888_s23 = sphi %s2951_s23, %s4125_s23   ;;  %s2884_s22 = sphi %s2949_s22, %s4111_s22   ;;  %s2880_s21 = sphi %s2947_s21, %s4124_s21   ;;  %s2876_s20 = sphi %s2945_s20, %s4123_s20   ;;  %s2872_s19 = sphi %s2943_s19, %s4122_s19   ;;  %s2868_s18 = sphi %s2941_s18, %s4121_s18   ;;  %s2864_s17 = sphi %s2939_s17, %s4120_s17   ;;  %s2860_s16 = sphi %s2937_s16, %s4119_s16   ;;  %s2856_s15 = sphi %s2935_s15, %s4118_s15   ;;  %s2852_s14 = sphi %s2933_s14, %s4117_s14   ;;  %s2848_s13 = sphi %s2931_s13, %s4116_s13   ;;  %s2844_s12 = sphi %s2929_s12, %s4115_s12  }
  0x11   : > { %4068 = sst [smem:[#allocation14_spill]] %s2880_s21  ;;  %p4050_p0 = scmp.eq.s32.totalorder %s2896_s25, 0 }
  0x12   : > { %4069 = sst [smem:[#allocation15_spill]] %s2884_s22  ;;  %p3003_p1 = scmp.ge.s32.totalorder %s4048_s26, 3 }
  0x13   : > { %4070 = sst [smem:[#allocation16_spill]] %s2892_s24  ;;  %p85_p2 = scmp.ne.s32.totalorder %s2864_s17, %s2860_s16 }
  0x14   : > { %p4049_p4 = scmp.lt.s32.totalorder %s2896_s25, 12  ;;  %s193_s29 = sand.u32 1, %s2896_s25  }
  0x15   : > { %p87_p5 = por %p85_p2, %p4050_p0  ;;  %s4047_s30 = sand.u32 1, %s2864_s17  }
  0x16   : > { %s2506_s4 = smul.u32 1152, %s4047_s30  ;;  %s4073_s1 = sld [smem:[#allocation23_spill]] }
  0x17   : > { %p3021_p6 = pnand %p4049_p4, %p87_p5  ;;  %s2238_s6 = smul.u32 384, %s2888_s23 }
  0x18   : > { %s197_s10 = scalar_lea.vmem [#allocation6], %s2506_s4  ;;  %s3034_s30 = scalar_lea.sflag [#allocation7], %s193_s29 }
  0x19   : > { %s207_s11 = sshll.u32 %s197_s10, 4  ;;  %p4058_p9 = pneg %p3021_p6  ;;  %s3031_s11 = int_to_ptr.vmem [resolvable:$true] %s207_s11 }
  0x1c   : > { %s3029_s9 = scalar_lea.hbm %s4073_s1, %s2238_s6  ;;  %s2661_s8 = scalar_lea.hbm %s4073_s1, 55296 }
  0x1d   : > { %s2656_s28 = scalar_lea.hbm %s3029_s9, 18432  ;;  %p2662_p12 = scmp.lt.u32.totalorder %s3029_s9, %s4073_s1 }
  0x1e   : > { %p2657_p8 = scmp.ne.s32.totalorder %s3029_s9, %s2656_s28  ;;  %p2663_p13 = scmp.lt.u32.totalorder %s2661_s8, %s2656_s28 }
  0x1f   : > { %p2665_p5 = scmp.lt.u32.totalorder %s2656_s28, %s3029_s9 }
  0x20   : > { %p2659_p10 = pnand %p4058_p9, %p2657_p8  ;;  %p2664_p2 = por %p2663_p13, %p2662_p12 }
  0x22   : > { %p2660_p11 = pneg %p2659_p10  ;;  %p2666_p4 = por %p2665_p5, %p2664_p2 }
  0x24   : > { %p2667_p3 = pnand %p2666_p4, %p2660_p11 }
  0x26   : > { %2670 = shalt.err (!%p2667_p3)
}
  0x27   : > { %s2671_s29 = scalar_lea.vmem %s3031_s11, 18432  ;;  %s2898_s10 = smov [#allocation6]  }
  0x28   : > { %p2672_p8 = scmp.ne.s32.totalorder %s3031_s11, %s2671_s29  ;;  %s2676_s6 = sshll.u32 %s2898_s10, 4  ;;  %s2677_s6 = int_to_ptr.vmem [resolvable:$false] %s2676_s6 }
  0x29   : > { %s2678_s26 = scalar_lea.vmem %s2677_s6, 36864  ;;  %p2679_p7 = scmp.lt.s32.totalorder %s3031_s11, %s2677_s6 }
  0x2a   : > { %p2674_p10 = pnand %p2672_p8, %p4058_p9  ;;  %p2680_p12 = scmp.lt.s32.totalorder %s2678_s26, %s2671_s29 }
  0x2c   : > { %p2675_p0 = pneg %p2674_p10  ;;  %p2681_p13 = por %p2680_p12, %p2679_p7 }
  0x2e   : > { %p2682_p2 = pnand %p2681_p13, %p2675_p0 }
  0x30   : > { %2685 = shalt.err (!%p2682_p2)
}
  0x31   : > { %s2899_s28 = smov 1152   ;;  %s4051_s7 = smov 384  }
  0x32   : > { %s4052_s8 = smov 24   ;;  %p234_p0 = scmp.lt.s32.totalorder %s2896_s25, 13 }
  0x33   : > { %2527 = dma.hbm_to_vmem [thread:$0]  (!%p3021_p6), %s3029_s9, 18432, %s3031_s11, %s3034_s30, %s2899_s28, %s4051_s7, %s4052_s8  }
  0x34   : > { %p4074_p3 = scmp.ge.s32.totalorder %s2896_s25, 1  ;;  %s3072_s29 = sadd.s32 4294967295, %s2896_s25  }
  0x35   : > { %s2224_s10 = sadd.s32 4294967294, %s2896_s25   ;;  %s4076_s6 = sadd.s32 1, %s2888_s23 }
  0x36   : > { %p3067_p4 = pnand %p4074_p3, %p234_p0  ;;  %s4127_s6 = smov (%p3003_p1, %s4076_s6), 0 }
  0x37   : > { %4077 = sst [smem:[#allocation17_spill]] %s4127_s6  ;;  %s41_s26 = sadd.s32 1, %s2892_s24 }
  0x38   : > { %s4075_s4 = scalar_select %p3067_p4, 1, 0 }
  0x39   : > { %s50_s9 = sadd.s32 1, %s2876_s20  ;;  %s4129_s26 = smov (!%p3003_p1, %s41_s26), %s2892_s24 }
  0x3a   : > { %p57_p7 = scmp.ne.s32.totalorder %s2876_s20, %s2872_s19  ;;  %p63_p11 = scmp.ne.s32.totalorder %s2872_s19, %s2868_s18 }
  0x3b   : > { %p43_p5 = scmp.ge.s32.totalorder %s4129_s26, 4  ;;  %p64_p8 = scmp.eq.s32.totalorder %s3072_s29, 0 }
  0x3c   : > { %p4078_p10 = scmp.eq.s32.totalorder %s2896_s25, 0  ;;  %s74_s28 = ssub.s32 %s2888_s23, %s4127_s6 }
  0x3d   : > { %s4131_s26 = smov (%p43_p5, %s4129_s26), 0  ;;  %p3101_p1 = por %p64_p8, %p63_p11 }
  0x3e   : > { %p3093_p12 = por %p4078_p10, %p57_p7  ;;  %4080 = sst [smem:[#allocation18_spill]] %s4131_s26 }
  0x3f   : > { %s4081_s27 = scalar_select %p3101_p1, 1, 0 }
  0x40   : > { %p76_p13 = scmp.eq.s32.totalorder %s74_s28, 0  ;;  %s45_s18 = ssub.s32 %s2892_s24, %s4131_s26 }
  0x41   : > { %p4082_p2 = scmp.ne.s32.totalorder %s2860_s16, %s2856_s15  ;;  %p48_p3 = scmp.eq.s32.totalorder %s45_s18, 0 }
  0x42   : > { %s129_s8 = sor.u32 %s74_s28, %s45_s18  ;;  %s4085_s1 = sadd.s32 1, %s2864_s17 }
  0x43   : > { %p3110_p0 = por %p4082_p2, %p64_p8  ;;  %p130_p7 = scmp.eq.s32.totalorder %s129_s8, 0 }
  0x44   : > { %s3117_s6 = scalar_select %p76_p13, %s2864_s17, %s4085_s1  }
  0x45   : > { %s4083_s7 = scalar_select %p3110_p0, 1, 0 }
  0x46   : > { %4086 = sst [smem:[#allocation20_spill]] %s3117_s6  ;;  %s132_s22 = sadd.s32 1, %s2852_s14 }
  0x47   : > { %4084 = sst [smem:[#allocation19_spill]] %s4083_s7  ;;  %p142_p11 = scmp.ne.s32.totalorder %s2852_s14, %s2848_s13 }
  0x48   : > { %s3120_s3 = scalar_select %p48_p3, %s2876_s20, %s50_s9  }
  0x49   : > { %p143_p5 = scmp.eq.s32.totalorder %s3072_s29, 11  ;;  %p148_p10 = scmp.ne.s32.totalorder %s2848_s13, %s2844_s12 }
  0x4a   : > { %4087 = sst [smem:[#allocation21_spill]] %s3120_s3  ;;  %p149_p2 = scmp.eq.s32.totalorder %s2224_s10, 11 }
  0x4b   : > { %s3127_s26 = scalar_select %p130_p7, %s2852_s14, %s132_s22  }
  0x4c   : > { %p3129_p8 = por %p143_p5, %p142_p11  ;;  %s169_s21 = sand.u32 1, %s2876_s20  }
  0x4d   : > { %s2504_s7 = smul.u32 768, %s169_s21  ;;  %p3136_p9 = por %p149_p2, %p148_p10 }
  0x4e   : > { %s4088_s15 = scalar_select %p3129_p8, 1, 0 }
  0x4f   : > { %s4089_s28 = scalar_select %p3136_p9, 1, 0 }
  0x50   : > { %s2505_s1 = smul.u32 12288, %s2892_s24  ;;  %p4090_p13 = scmp.lt.s32.totalorder %s2896_s25, 12 }
  0x51   : > { %s4092_s0 = sld [smem:[#allocation22_spill]]  ;;  %s173_s10 = scalar_lea.vmem [#allocation3], %s2504_s7 }
  0x52   : > { %p3145_p3 = pnand %p4090_p13, %p3093_p12  ;;  %s183_s3 = sshll.u32 %s173_s10, 4  ;;  %s3154_s3 = int_to_ptr.vmem [resolvable:$true] %s183_s3 }
  0x53   : > { %s3156_s11 = scalar_lea.sflag [#allocation4], %s169_s21 }
  0x54   : > { %p2688_p7 = pneg %p3145_p3 }
  0x57   : > { %s3152_s18 = scalar_lea.hbm %s4092_s0, %s2505_s1  ;;  %s2691_s9 = scalar_lea.hbm %s4092_s0, 49152 }
  0x58   : > { %s2686_s24 = scalar_lea.hbm %s3152_s18, 12288  ;;  %p2692_p10 = scmp.lt.u32.totalorder %s3152_s18, %s4092_s0 }
  0x59   : > { %p2687_p12 = scmp.ne.s32.totalorder %s3152_s18, %s2686_s24  ;;  %p2693_p2 = scmp.lt.u32.totalorder %s2691_s9, %s2686_s24 }
  0x5a   : > { %p2695_p9 = scmp.lt.u32.totalorder %s2686_s24, %s3152_s18 }
  0x5b   : > { %p2689_p11 = pnand %p2688_p7, %p2687_p12  ;;  %p2694_p13 = por %p2693_p2, %p2692_p10 }
  0x5d   : > { %p2690_p5 = pneg %p2689_p11  ;;  %p2696_p8 = por %p2695_p9, %p2694_p13 }
  0x5f   : > { %p2697_p0 = pnand %p2696_p8, %p2690_p5 }
  0x61   : > { %2700 = shalt.err (!%p2697_p0)
}
  0x62   : > { %s2701_s21 = scalar_lea.vmem %s3154_s3, 12288  ;;  %s2902_s7 = smov [#allocation3]  }
  0x63   : > { %p2702_p12 = scmp.ne.s32.totalorder %s3154_s3, %s2701_s21  ;;  %s2706_s10 = sshll.u32 %s2902_s7, 4  ;;  %s2707_s10 = int_to_ptr.vmem [resolvable:$false] %s2706_s10 }
  0x64   : > { %s2708_s20 = scalar_lea.vmem %s2707_s10, 24576  ;;  %p2709_p4 = scmp.lt.s32.totalorder %s3154_s3, %s2707_s10 }
  0x65   : > { %p2704_p11 = pnand %p2702_p12, %p2688_p7  ;;  %p2710_p10 = scmp.lt.s32.totalorder %s2708_s20, %s2701_s21 }
  0x67   : > { %p2705_p1 = pneg %p2704_p11  ;;  %p2711_p2 = por %p2710_p10, %p2709_p4 }
  0x69   : > { %p2712_p9 = pnand %p2711_p2, %p2705_p1 }
  0x6b   : > { %2715 = shalt.err (!%p2712_p9)
}
  0x6c   : > { %s4093_s24 = smov 24   ;;  %s4094_s6 = smov 384  }
  0x6d   : > { %2524 = dma.hbm_to_vmem [thread:$0]  (!%p3145_p3), %s3152_s18, 12288, %s3154_s3, %s3156_s11, %s4094_s6, %s4094_s6, %s4093_s24  }
  0x6e   : > { %s4095_s1 = sand.u32 1, %s2864_s17   ;;  %s2239_s9 = smul.u32 48, %s2888_s23 }
  0x6f   : > { %s2507_s22 = smul.u32 3, %s4095_s1  ;;  %p4096_p1 = pneg %p3021_p6 }
  0x70   : > { %s3193_s10 = scalar_lea.hbm %s4045_s2, %s2239_s9  ;;  %s2721_s11 = scalar_lea.hbm %s4045_s2, 144 }
  0x71   : > { %s221_s8 = scalar_lea.vmem [#allocation8], %s2507_s22  ;;  %s2716_s0 = scalar_lea.hbm %s3193_s10, 48 }
  0x72   : > { %s229_s20 = sshll.u32 %s221_s8, 4  ;;  %p2717_p4 = scmp.ne.s32.totalorder %s3193_s10, %s2716_s0  ;;  %s230_s20 = int_to_ptr.vmem [resolvable:$true] %s229_s20 }
  0x73   : > { %p2722_p3 = scmp.lt.u32.totalorder %s3193_s10, %s4045_s2  ;;  %p2723_p7 = scmp.lt.u32.totalorder %s2721_s11, %s2716_s0 }
  0x74   : > { %p2719_p0 = pnand %p2717_p4, %p4096_p1  ;;  %p2725_p13 = scmp.lt.u32.totalorder %s2716_s0, %s3193_s10 }
  0x75   : > { %p2724_p5 = por %p2723_p7, %p2722_p3 }
  0x76   : > { %p2720_p8 = pneg %p2719_p0 }
  0x77   : > { %p2726_p12 = por %p2725_p13, %p2724_p5 }
  0x79   : > { %p2727_p11 = pnand %p2726_p12, %p2720_p8 }
  0x7b   : > { %2730 = shalt.err (!%p2727_p11)
}
  0x7c   : > { %s2731_s1 = scalar_lea.vmem %s230_s20, 48  ;;  %p4097_p2 = pmov %p4096_p1 }
  0x7d   : > { %p2732_p10 = scmp.ne.s32.totalorder %s230_s20, %s2731_s1  ;;  %s2903_s22 = smov [#allocation8]  }
  0x7e   : > { %s2736_s9 = sshll.u32 %s2903_s22, 4  ;;  %s2737_s9 = int_to_ptr.vmem [resolvable:$false] %s2736_s9 }
  0x7f   : > { %p2734_p9 = pnand %p2732_p10, %p4097_p2  ;;  %s2738_s7 = scalar_lea.vmem %s2737_s9, 96 }
  0x80   : > { %p2739_p1 = scmp.lt.s32.totalorder %s230_s20, %s2737_s9  ;;  %p2740_p0 = scmp.lt.s32.totalorder %s2738_s7, %s2731_s1 }
  0x81   : > { %p2735_p4 = pneg %p2734_p9 }
  0x82   : > { %p2741_p3 = por %p2740_p0, %p2739_p1 }
  0x84   : > { %p2742_p7 = pnand %p2741_p3, %p2735_p4 }
  0x86   : > { %2745 = shalt.err (!%p2742_p7)
}
  0x87   : > { %2530 = dma.hbm_to_vmem [thread:$0]  (!%p3021_p6), %s3193_s10, 48, %s230_s20, %s3034_s30  }
  0x88   : > { %p4098_p8 = scmp.ne.s32.totalorder %s4075_s4, 0 }
  0x89   : > { %s240_s0 = sand.u32 (!%p4098_p8), 1, %s2872_s19   ;;  %p4099_p5 = scmp.ne.s32.totalorder (!%p4098_p8), %s4081_s27, 0 }
  0x8a   : > { %238 = sbr.rel (%p4098_p8) target bundleno = 659 (0x293), region = 32  ;;  %s241_s8 = scalar_lea.sflag (!%p4098_p8), [#allocation4], %s240_s0 }
  0x8b   : > { %s2508_s21 = smul.u32 (!%p4098_p8), 768, %s240_s0 }
  0x8d   : > { %s3218_s3 = scalar_lea.vmem (!%p4098_p8), [#allocation3], %s2508_s21 }
  0x91   : > { %2831 = dma.done.wait (%p4099_p5), %s241_s8, 12288  }
  0x92   : > { %2833 = vsyncadd (%p4099_p5), %s241_s8, 4294955008  ;;  %s4100_s5 = sld [smem:[#allocation19_spill]]  ;;  %s249_s30 = sand.u32 1, %s3072_s29  }
  0x93   : > { %s251_s10 = sand.u32 1, %s2860_s16   ;;  %s250_s20 = scalar_lea.sflag [#allocation7], %s249_s30 }
  0x94   : > { %s2509_s4 = smul.u32 1152, %s251_s10 }
  0x96   : > { %s3228_s18 = scalar_lea.vmem [#allocation6], %s2509_s4 }
  0x98   : > { %p4101_p6 = scmp.ne.s32.totalorder %s4100_s5, 0 }
  0x9a   : > { %2835 = dma.done.wait (%p4101_p6), %s250_s20, 18480  }
  0x9b   : > { %2837 = vsyncadd (%p4101_p6), %s250_s20, 4294948816  ;;  %v2904_v0 = vmov 0   ;;  %v644_v1 = vld [vmem:[%s3228_s18 + $0x8] sm:$0xff]  ;;  %v647_v2 = vld [vmem:[%s3228_s18 + $0x20] sm:$0xff]  ;;  %s2510_s29 = smul.u32 3, %s251_s10  ;;  %s292_s11 = sand.u32 1, %s2848_s13  }
  0x9c   : > { %1184 = vmatprep.mubr.bf16.mxu1 %v2904_v0  ;;  %v740_v3 = vld [vmem:[%s3228_s18 + $0x308] sm:$0xff]  ;;  %v788_v4 = vpack.c.bf16 %v647_v2, %v644_v1  ;;  %v743_v5 = vld [vmem:[%s3228_s18 + $0x320] sm:$0xff]  ;;  %v646_v7 = vld [vmem:[%s3228_s18 + $0x18] sm:$0xff]  ;;  %s2511_s24 = smul.u32 768, %s292_s11  ;;  %s4102_s1 = sld [smem:[#allocation14_spill]] }
  0x9d   : > { %v643_v6 = vld [vmem:[%s3228_s18] sm:$0xff]  ;;  %v3241_v8 = vpack.c.bf16 %v743_v5, %v740_v3  ;;  %v742_v11 = vld [vmem:[%s3228_s18 + $0x318] sm:$0xff]  ;;  %v653_v14 = vld [vmem:[%s3228_s18 + $0x50] sm:$0xff]  ;;  %s262_s27 = scalar_lea.vmem [#allocation8], %s2510_s29  ;;  %s4103_s22 = sld [smem:[#allocation15_spill]] }
  0x9e   : > { %v787_v9 = vpack.c.bf16 %v646_v7, %v643_v6  ;;  %v739_v10 = vld [vmem:[%s3228_s18 + $0x300] sm:$0xff]  ;;  %v650_v12 = vld [vmem:[%s3228_s18 + $0x38] sm:$0xff]  ;;  %859 = vmatprep.subr.bf16.mxu0 %v788_v4  ;;  %v749_v16 = vld [vmem:[%s3228_s18 + $0x350] sm:$0xff]  ;;  %s3681_s6 = scalar_lea.vmem [#allocation9], %s2511_s24  ;;  %s4104_s30 = sld [smem:[#allocation24_spill]] }
  0x9f   : > { %v3246_v13 = vpack.c.bf16 %v742_v11, %v739_v10  ;;  %v746_v15 = vld [vmem:[%s3228_s18 + $0x338] sm:$0xff]  ;;  %2424 = vmatprep.subr.bf16.mxu1 %v3241_v8  ;;  %v791_v17 = vpack.c.bf16 %v653_v14, %v650_v12  ;;  %v649_v19 = vld [vmem:[%s3228_s18 + $0x30] sm:$0xff]  ;;  %v652_v20 = vld [vmem:[%s3228_s18 + $0x48] sm:$0xff]  ;;  %s2084_s8 = sshll.u32 %s3681_s6, 4  ;;  %s3967_s4 = scalar_lea.sflag [#allocation5], %s292_s11  ;;  %s3959_s8 = int_to_ptr.vmem [resolvable:$true] %s2084_s8 }
  0xa0   : > { %860 = vmatpush1.bf16.msra.mxu0 %v787_v9  ;;  %v3252_v18 = vpack.c.bf16 %v749_v16, %v746_v15  ;;  %v745_v21 = vld [vmem:[%s3228_s18 + $0x330] sm:$0xff]  ;;  %v790_v22 = vpack.c.bf16 %v652_v20, %v649_v19  ;;  %v748_v23 = vld [vmem:[%s3228_s18 + $0x348] sm:$0xff]  ;;  %v659_v25 = vld [vmem:[%s3228_s18 + $0x80] sm:$0xff]  ;;  %s2746_s20 = scalar_lea.vmem %s3959_s8, 12288  ;;  %p4105_p12 = scmp.ne.s32.totalorder %s4088_s15, 0 }
  0xa1   : > { %2432 = vmatpush1.bf16.msra.mxu1 %v3246_v13  ;;  %v656_v24 = vld [vmem:[%s3228_s18 + $0x68] sm:$0xff]  ;;  %861 = vmatprep.subr.bf16.mxu0 %v791_v17  ;;  %v3262_v26 = vpack.c.bf16 %v748_v23, %v745_v21  ;;  %v755_v29 = vld [vmem:[%s3228_s18 + $0x380] sm:$0xff]  ;;  %v658_v32 = vld [vmem:[%s3228_s18 + $0x78] sm:$0xff]  ;;  %p2747_p13 = scmp.ne.s32.totalorder %s3959_s8, %s2746_s20 }
  0xa2   : > { %2425 = vmatprep.subr.bf16.mxu1 %v3252_v18  ;;  %v794_v27 = vpack.c.bf16 %v659_v25, %v656_v24  ;;  %v752_v28 = vld [vmem:[%s3228_s18 + $0x368] sm:$0xff]  ;;  %v655_v30 = vld [vmem:[%s3228_s18 + $0x60] sm:$0xff]  ;;  %v754_v34 = vld [vmem:[%s3228_s18 + $0x378] sm:$0xff]  ;;  %s2076_s9 = smul.u32 3, %s4102_s1 }
  0xa3   : > { %v3267_v31 = vpack.c.bf16 %v755_v29, %v752_v28  ;;  %v751_v33 = vld [vmem:[%s3228_s18 + $0x360] sm:$0xff]  ;;  %v793_v35 = vpack.c.bf16 %v658_v32, %v655_v30  ;;  %v662_v36 = vld [vmem:[%s3228_s18 + $0x98] sm:$0xff]  ;;  %v665_v37 = vld [vmem:[%s3228_s18 + $0xb0] sm:$0xff]  ;;  %s2512_s7 = smul.u32 288, %s4103_s22  ;;  %p2748_p11 = pnand %p2747_p13, %p4105_p12 }
  0xa4   : > { %862 = vmatpush1.bf16.msra.mxu0 %v790_v22  ;;  %v758_v38 = vld [vmem:[%s3228_s18 + $0x398] sm:$0xff]  ;;  %v3276_v39 = vpack.c.bf16 %v754_v34, %v751_v33  ;;  %v797_v40 = vpack.c.bf16 %v665_v37, %v662_v36  ;;  %v761_v41 = vld [vmem:[%s3228_s18 + $0x3b0] sm:$0xff]  ;;  %v664_v43 = vld [vmem:[%s3228_s18 + $0xa8] sm:$0xff] }
  0xa5   : > { %2433 = vmatpush1.bf16.msra.mxu1 %v3262_v26  ;;  %863 = vmatprep.subr.bf16.mxu0 %v794_v27  ;;  %v661_v42 = vld [vmem:[%s3228_s18 + $0x90] sm:$0xff]  ;;  %v3282_v44 = vpack.c.bf16 %v761_v41, %v758_v38  ;;  %v760_v46 = vld [vmem:[%s3228_s18 + $0x3a8] sm:$0xff]  ;;  %v671_v48 = vld [vmem:[%s3228_s18 + $0xe0] sm:$0xff]  ;;  %s2081_s0 = sadd.s32 %s2512_s7, %s2076_s9  ;;  %p2749_p10 = pneg %p2748_p11 }
  0xa6   : > { %2426 = vmatprep.subr.bf16.mxu1 %v3267_v31  ;;  %v757_v45 = vld [vmem:[%s3228_s18 + $0x390] sm:$0xff]  ;;  %v668_v47 = vld [vmem:[%s3228_s18 + $0xc8] sm:$0xff]  ;;  %v767_v50 = vld [vmem:[%s3228_s18 + $0x3e0] sm:$0xff]  ;;  %v796_v51 = vpack.c.bf16 %v664_v43, %v661_v42  ;;  %s2235_s21 = sshll.u32 %s2081_s0, 7 }
  0xa7   : > { %v764_v49 = vld [vmem:[%s3228_s18 + $0x3c8] sm:$0xff]  ;;  %v3291_v52 = vpack.c.bf16 %v760_v46, %v757_v45  ;;  %v800_v53 = vpack.c.bf16 %v671_v48, %v668_v47  ;;  %v667_v54 = vld [vmem:[%s3228_s18 + $0xc0] sm:$0xff]  ;;  %v670_v55 = vld [vmem:[%s3228_s18 + $0xd8] sm:$0xff]  ;;  %s3954_s10 = scalar_lea.hbm %s4104_s30, %s2235_s21 }
  0xa8   : > { %864 = vmatpush1.bf16.msra.mxu0 %v793_v35  ;;  %v763_v56 = vld [vmem:[%s3228_s18 + $0x3c0] sm:$0xff]  ;;  %v3297_v57 = vpack.c.bf16 %v767_v50, %v764_v49  ;;  %v766_v58 = vld [vmem:[%s3228_s18 + $0x3d8] sm:$0xff]  ;;  %v677_v60 = vld [vmem:[%s3228_s18 + $0x110] sm:$0xff]  ;;  %v799_v63 = vpack.c.bf16 %v670_v55, %v667_v54 }
  0xa9   : > { %2434 = vmatpush1.bf16.msra.mxu1 %v3276_v39  ;;  %865 = vmatprep.subr.bf16.mxu0 %v797_v40  ;;  %v674_v59 = vld [vmem:[%s3228_s18 + $0xf8] sm:$0xff]  ;;  %v773_v62 = vld [vmem:[%s3228_s18 + $0x410] sm:$0xff]  ;;  %v3305_v1 = vpack.c.bf16 %v766_v58, %v763_v56  ;;  %v676_v4 = vld [vmem:[%s3228_s18 + $0x108] sm:$0xff] }
  0xaa   : > { %2427 = vmatprep.subr.bf16.mxu1 %v3282_v44  ;;  %v770_v61 = vld [vmem:[%s3228_s18 + $0x3f8] sm:$0xff]  ;;  %v803_v2 = vpack.c.bf16 %v677_v60, %v674_v59  ;;  %v673_v3 = vld [vmem:[%s3228_s18 + $0xf0] sm:$0xff]  ;;  %v772_v7 = vld [vmem:[%s3228_s18 + $0x408] sm:$0xff] }
  0xab   : > { %v769_v5 = vld [vmem:[%s3228_s18 + $0x3f0] sm:$0xff]  ;;  %v3311_v6 = vpack.c.bf16 %v773_v62, %v770_v61  ;;  %v680_v9 = vld [vmem:[%s3228_s18 + $0x128] sm:$0xff]  ;;  %v683_v10 = vld [vmem:[%s3228_s18 + $0x140] sm:$0xff]  ;;  %v802_v14 = vpack.c.bf16 %v676_v4, %v673_v3 }
  0xac   : > { %866 = vmatpush1.bf16.msra.mxu0 %v796_v51  ;;  %v776_v11 = vld [vmem:[%s3228_s18 + $0x428] sm:$0xff]  ;;  %v779_v12 = vld [vmem:[%s3228_s18 + $0x440] sm:$0xff]  ;;  %v3319_v15 = vpack.c.bf16 %v772_v7, %v769_v5  ;;  %v806_v16 = vpack.c.bf16 %v683_v10, %v680_v9  ;;  %v682_v19 = vld [vmem:[%s3228_s18 + $0x138] sm:$0xff] }
  0xad   : > { %2435 = vmatpush1.bf16.msra.mxu1 %v3291_v52  ;;  %867 = vmatprep.subr.bf16.mxu0 %v800_v53  ;;  %v679_v17 = vld [vmem:[%s3228_s18 + $0x120] sm:$0xff]  ;;  %v3325_v21 = vpack.c.bf16 %v779_v12, %v776_v11  ;;  %v778_v22 = vld [vmem:[%s3228_s18 + $0x438] sm:$0xff]  ;;  %v689_v24 = vld [vmem:[%s3228_s18 + $0x170] sm:$0xff] }
  0xae   : > { %2428 = vmatprep.subr.bf16.mxu1 %v3297_v57  ;;  %v775_v20 = vld [vmem:[%s3228_s18 + $0x420] sm:$0xff]  ;;  %v686_v23 = vld [vmem:[%s3228_s18 + $0x158] sm:$0xff]  ;;  %v785_v27 = vld [vmem:[%s3228_s18 + $0x470] sm:$0xff]  ;;  %v805_v28 = vpack.c.bf16 %v682_v19, %v679_v17 }
  0xaf   : > { %v782_v25 = vld [vmem:[%s3228_s18 + $0x458] sm:$0xff]  ;;  %v3333_v29 = vpack.c.bf16 %v778_v22, %v775_v20  ;;  %v809_v30 = vpack.c.bf16 %v689_v24, %v686_v23  ;;  %v685_v32 = vld [vmem:[%s3228_s18 + $0x150] sm:$0xff]  ;;  %v688_v33 = vld [vmem:[%s3228_s18 + $0x168] sm:$0xff] }
  0xb0   : > { %868 = vmatpush1.bf16.msra.mxu0 %v799_v63  ;;  %v781_v34 = vld [vmem:[%s3228_s18 + $0x450] sm:$0xff]  ;;  %v3339_v35 = vpack.c.bf16 %v785_v27, %v782_v25  ;;  %v784_v36 = vld [vmem:[%s3228_s18 + $0x468] sm:$0xff]  ;;  %v695_v38 = vld [vmem:[%s3228_s18 + $0x1a0] sm:$0xff]  ;;  %v808_v42 = vpack.c.bf16 %v688_v33, %v685_v32 }
  0xb1   : > { %2436 = vmatpush1.bf16.msra.mxu1 %v3305_v1  ;;  %869 = vmatprep.subr.bf16.mxu0 %v803_v2  ;;  %v692_v37 = vld [vmem:[%s3228_s18 + $0x188] sm:$0xff]  ;;  %v693_v40 = vld [vmem:[%s3228_s18 + $0x190] sm:$0xff]  ;;  %v3349_v46 = vpack.c.bf16 %v784_v36, %v781_v34  ;;  %v691_v48 = vld [vmem:[%s3228_s18 + $0x180] sm:$0xff] }
  0xb2   : > { %2429 = vmatprep.subr.bf16.mxu1 %v3311_v6  ;;  %v696_v41 = vld [vmem:[%s3228_s18 + $0x1a8] sm:$0xff]  ;;  %v561_v43 = vld [vmem:[%s3218_s3 + $0x1f0] sm:$0xff]  ;;  %v812_v47 = vpack.c.bf16 %v695_v38, %v692_v37  ;;  %v694_v49 = vld [vmem:[%s3228_s18 + $0x198] sm:$0xff] }
  0xb3   : > { %v564_v45 = vld [vmem:[%s3218_s3 + $0x208] sm:$0xff]  ;;  %v645_v50 = vld [vmem:[%s3228_s18 + $0x10] sm:$0xff]  ;;  %v813_v51 = vpack.c.bf16 %v696_v41, %v693_v40  ;;  %v698_v54 = vld [vmem:[%s3228_s18 + $0x1b8] sm:$0xff]  ;;  %v811_v60 = vpack.c.bf16 %v694_v49, %v691_v48 }
  0xb4   : > { %870 = vmatpush1.bf16.msra.mxu0 %v802_v14  ;;  %v648_v53 = vld [vmem:[%s3228_s18 + $0x28] sm:$0xff]  ;;  %v701_v55 = vld [vmem:[%s3228_s18 + $0x1d0] sm:$0xff]  ;;  %v699_v56 = vld [vmem:[%s3228_s18 + $0x1c0] sm:$0xff]  ;;  %v3360_v59 = vpack.c.bf16 %v564_v45, %v561_v43 }
  0xb5   : > { %2437 = vmatpush1.bf16.msra.mxu1 %v3319_v15  ;;  %871 = vmatprep.subr.bf16.mxu0 %v806_v16  ;;  %v702_v58 = vld [vmem:[%s3228_s18 + $0x1d8] sm:$0xff]  ;;  %v789_v61 = vpack.c.bf16 %v648_v53, %v645_v50  ;;  %v815_v62 = vpack.c.bf16 %v701_v55, %v698_v54  ;;  %v697_v63 = vld [vmem:[%s3228_s18 + $0x1b0] sm:$0xff]  ;;  %v700_v2 = vld [vmem:[%s3228_s18 + $0x1c8] sm:$0xff] }
  0xb6   : > { %2430 = vmatprep.subr.bf16.mxu1 %v3325_v21  ;;  %v651_v3 = vld [vmem:[%s3228_s18 + $0x40] sm:$0xff]  ;;  %v816_v4 = vpack.c.bf16 %v702_v58, %v699_v56  ;;  %v654_v5 = vld [vmem:[%s3228_s18 + $0x58] sm:$0xff]  ;;  %v704_v7 = vld [vmem:[%s3228_s18 + $0x1e8] sm:$0xff]  ;;  %v814_v12 = vpack.c.bf16 %v700_v2, %v697_v63 }
  0xb7   : > { %v707_v9 = vld [vmem:[%s3228_s18 + $0x200] sm:$0xff]  ;;  %v705_v10 = vld [vmem:[%s3228_s18 + $0x1f0] sm:$0xff]  ;;  %v708_v11 = vld [vmem:[%s3228_s18 + $0x208] sm:$0xff]  ;;  %v792_v17 = vpack.c.bf16 %v654_v5, %v651_v3 }
  0xb8   : > { %872 = vmatpush1.bf16.msra.mxu0 %v805_v28  ;;  %v567_v14 = vld [vmem:[%s3218_s3 + $0x220] sm:$0xff]  ;;  %v570_v16 = vld [vmem:[%s3218_s3 + $0x238] sm:$0xff]  ;;  %v818_v19 = vpack.c.bf16 %v707_v9, %v704_v7  ;;  %v713_v24 = vld [vmem:[%s3228_s18 + $0x230] sm:$0xff]  ;;  %v819_v25 = vpack.c.bf16 %v708_v11, %v705_v10 }
  0xb9   : > { %2438 = vmatpush1.bf16.msra.mxu1 %v3333_v29  ;;  %873 = vmatprep.subr.bf16.mxu0 %v809_v30  ;;  %v703_v20 = vld [vmem:[%s3228_s18 + $0x1e0] sm:$0xff]  ;;  %v706_v22 = vld [vmem:[%s3228_s18 + $0x1f8] sm:$0xff]  ;;  %v657_v27 = vld [vmem:[%s3228_s18 + $0x70] sm:$0xff]  ;;  %v3383_v33 = vpack.c.bf16 %v570_v16, %v567_v14 }
  0xba   : > { %2431 = vmatprep.subr.bf16.mxu1 %v3339_v35  ;;  %v710_v23 = vld [vmem:[%s3228_s18 + $0x218] sm:$0xff]  ;;  %v660_v28 = vld [vmem:[%s3228_s18 + $0x88] sm:$0xff]  ;;  %v711_v30 = vld [vmem:[%s3228_s18 + $0x220] sm:$0xff]  ;;  %v817_v34 = vpack.c.bf16 %v706_v22, %v703_v20 }
  0xbb   : > { %v714_v32 = vld [vmem:[%s3228_s18 + $0x238] sm:$0xff]  ;;  %v709_v36 = vld [vmem:[%s3228_s18 + $0x210] sm:$0xff]  ;;  %v712_v37 = vld [vmem:[%s3228_s18 + $0x228] sm:$0xff]  ;;  %v821_v38 = vpack.c.bf16 %v713_v24, %v710_v23  ;;  %v795_v40 = vpack.c.bf16 %v660_v28, %v657_v27 }
  0xbc   : > { %874 = vmatpush1.bf16.msra.mxu0 %v808_v42  ;;  %v716_v41 = vld [vmem:[%s3228_s18 + $0x248] sm:$0xff]  ;;  %v719_v42 = vld [vmem:[%s3228_s18 + $0x260] sm:$0xff]  ;;  %v822_v45 = vpack.c.bf16 %v714_v32, %v711_v30  ;;  %v717_v50 = vld [vmem:[%s3228_s18 + $0x250] sm:$0xff]  ;;  %v820_v54 = vpack.c.bf16 %v712_v37, %v709_v36 }
  0xbd   : > { %2439 = vmatpush1.bf16.msra.mxu1 %v3349_v46  ;;  %875 = vmatprep.subr.bf16.mxu0 %v812_v47  ;;  %v663_v43 = vld [vmem:[%s3228_s18 + $0xa0] sm:$0xff]  ;;  %v666_v47 = vld [vmem:[%s3228_s18 + $0xb8] sm:$0xff]  ;;  %v500_v48 = vld [vmem:[%s3218_s3 + $0x8] sm:$0xff]  ;;  %v824_v56 = vpack.c.bf16 %v719_v42, %v716_v41 }
  0xbe   : > { %2240 = vmatprep.subr.bf16.mxu1 %v813_v51  ;;  %v503_v49 = vld [vmem:[%s3218_s3 + $0x20] sm:$0xff]  ;;  %v720_v51 = vld [vmem:[%s3228_s18 + $0x268] sm:$0xff]  ;;  %v573_v55 = vld [vmem:[%s3218_s3 + $0x250] sm:$0xff] }
  0xbf   : > { %v3395_v53 = vpack.c.bf16 %v503_v49, %v500_v48  ;;  %v576_v58 = vld [vmem:[%s3218_s3 + $0x268] sm:$0xff]  ;;  %v722_v63 = vld [vmem:[%s3228_s18 + $0x278] sm:$0xff]  ;;  %v725_v2 = vld [vmem:[%s3228_s18 + $0x290] sm:$0xff]  ;;  %v825_v3 = vpack.c.bf16 %v720_v51, %v717_v50 }
  0xc0   : > { %1185 = vmatmul.mubr.bf16.vlgmr.msra.gmra.mrb[0].mxu1 %v3360_v59  ;;  %876 = vmatpush1.bf16.msra.mxu0 %v811_v60  ;;  %v715_v60 = vld [vmem:[%s3228_s18 + $0x240] sm:$0xff]  ;;  %v672_v5 = vld [vmem:[%s3228_s18 + $0xe8] sm:$0xff]  ;;  %v3408_v7 = vpack.c.bf16 %v576_v58, %v573_v55  ;;  %v726_v11 = vld [vmem:[%s3228_s18 + $0x298] sm:$0xff] }
  0xc1   : > { %2241 = vmatpush3.bf16.msra.mxu1 %v789_v61  ;;  %877 = vmatprep.subr.bf16.mxu0 %v815_v62  ;;  %v718_v61 = vld [vmem:[%s3228_s18 + $0x258] sm:$0xff]  ;;  %v798_v62 = vpack.c.bf16 %v666_v47, %v663_v43  ;;  %v723_v10 = vld [vmem:[%s3228_s18 + $0x280] sm:$0xff]  ;;  %v721_v14 = vld [vmem:[%s3228_s18 + $0x270] sm:$0xff] }
  0xc2   : > { %2242 = vmatprep.subr.bf16.mxu1 %v816_v4  ;;  %1194 = vmatprep.mubr.bf16.mxu1 %v2904_v0  ;;  %v669_v4 = vld [vmem:[%s3228_s18 + $0xd0] sm:$0xff]  ;;  %v823_v9 = vpack.c.bf16 %v718_v61, %v715_v60  ;;  %v724_v16 = vld [vmem:[%s3228_s18 + $0x288] sm:$0xff]  ;;  %v828_v22 = vpack.c.bf16 %v726_v11, %v723_v10  ;;  %v675_v23 = vld [vmem:[%s3228_s18 + $0x100] sm:$0xff] }
  0xc3   : > { %891 = vmatprep.mubr.bf16.mxu0 %v3395_v53  ;;  %v801_v20 = vpack.c.bf16 %v672_v5, %v669_v4  ;;  %v678_v24 = vld [vmem:[%s3228_s18 + $0x118] sm:$0xff]  ;;  %v579_v27 = vld [vmem:[%s3218_s3 + $0x280] sm:$0xff]  ;;  %v729_v28 = vld [vmem:[%s3228_s18 + $0x2b0] sm:$0xff] }
  0xc4   : > { %878 = vmatpush1.bf16.msra.mxu0 %v814_v12  ;;  %v827_v12 = vpack.c.bf16 %v725_v2, %v722_v63  ;;  %v732_v30 = vld [vmem:[%s3228_s18 + $0x2c8] sm:$0xff]  ;;  %v727_v36 = vld [vmem:[%s3228_s18 + $0x2a0] sm:$0xff]  ;;  %v730_v37 = vld [vmem:[%s3228_s18 + $0x2b8] sm:$0xff]  ;;  %v804_v41 = vpack.c.bf16 %v678_v24, %v675_v23 }
  0xc5   : > { %2243 = vmatpush3.bf16.msra.mxu1 %v792_v17  ;;  %879 = vmatprep.subr.bf16.mxu0 %v818_v19  ;;  %v728_v17 = vld [vmem:[%s3228_s18 + $0x2a8] sm:$0xff]  ;;  %v731_v19 = vld [vmem:[%s3228_s18 + $0x2c0] sm:$0xff]  ;;  %v831_v42 = vpack.c.bf16 %v732_v30, %v729_v28  ;;  %v681_v43 = vld [vmem:[%s3228_s18 + $0x130] sm:$0xff]  ;;  %v829_v48 = vpack.c.bf16 %v730_v37, %v727_v36 }
  0xc6   : > { %2244 = vmatprep.subr.bf16.mxu1 %v819_v25  ;;  %v826_v25 = vpack.c.bf16 %v724_v16, %v721_v14  ;;  %v830_v32 = vpack.c.bf16 %v731_v19, %v728_v17  ;;  %v735_v49 = vld [vmem:[%s3228_s18 + $0x2e0] sm:$0xff]  ;;  %v738_v50 = vld [vmem:[%s3228_s18 + $0x2f8] sm:$0xff]  ;;  %v736_v55 = vld [vmem:[%s3228_s18 + $0x2e8] sm:$0xff] }
  0xc7   : > { %v499_v58 = vld [vmem:[%s3218_s3] sm:$0xff]  ;;  %v834_v60 = vpack.c.bf16 %v738_v50, %v735_v49  ;;  %v502_v2 = vld [vmem:[%s3218_s3 + $0x18] sm:$0xff]  ;;  %v744_v4 = vld [vmem:[%s3228_s18 + $0x328] sm:$0xff] }
  0xc8   : > { %1195 = vmatmul.mubr.bf16.gmra.mrb[4].mxu1 %v3383_v33  ;;  %880 = vmatpush1.bf16.msra.mxu0 %v817_v34  ;;  %v582_v34 = vld [vmem:[%s3218_s3 + $0x298] sm:$0xff]  ;;  %v687_v61 = vld [vmem:[%s3228_s18 + $0x160] sm:$0xff]  ;;  %v585_v5 = vld [vmem:[%s3218_s3 + $0x2b0] sm:$0xff]  ;;  %v595_v14 = vpack.c.bf16 %v502_v2, %v499_v58 }
  0xc9   : > { %881 = vmatprep.subr.bf16.mxu0 %v821_v38  ;;  %2245 = vmatpush3.bf16.msra.mxu1 %v795_v40  ;;  %v734_v38 = vld [vmem:[%s3228_s18 + $0x2d8] sm:$0xff]  ;;  %v737_v40 = vld [vmem:[%s3228_s18 + $0x2f0] sm:$0xff]  ;;  %v3430_v47 = vpack.c.bf16 %v582_v34, %v579_v27  ;;  %v591_v23 = vld [vmem:[%s3218_s3 + $0x2e0] sm:$0xff] }
  0xca   : > { %1204 = vmatprep.mubr.bf16.mxu1 %v2904_v0  ;;  %2246 = vmatprep.subr.bf16.mxu1 %v822_v45  ;;  %v684_v45 = vld [vmem:[%s3228_s18 + $0x148] sm:$0xff]  ;;  %v833_v51 = vpack.c.bf16 %v737_v40, %v734_v38  ;;  %v506_v10 = vld [vmem:[%s3218_s3 + $0x38] sm:$0xff]  ;;  %v509_v11 = vld [vmem:[%s3218_s3 + $0x50] sm:$0xff] }
  0xcb   : > { %v599_v19 = vpack.c.bf16 %v509_v11, %v506_v10  ;;  %v594_v24 = vld [vmem:[%s3218_s3 + $0x2f8] sm:$0xff]  ;;  %v511_v30 = vld [vmem:[%s3218_s3 + $0x60] sm:$0xff]  ;;  %v521_v34 = vld [vmem:[%s3218_s3 + $0xb0] sm:$0xff] }
  0xcc   : > { %882 = vmatpush1.bf16.msra.mxu0 %v820_v54  ;;  %v733_v54 = vld [vmem:[%s3228_s18 + $0x2d0] sm:$0xff]  ;;  %v3461_v28 = vpack.c.bf16 %v594_v24, %v591_v23  ;;  %v750_v36 = vld [vmem:[%s3228_s18 + $0x358] sm:$0xff]  ;;  %v756_v40 = vld [vmem:[%s3228_s18 + $0x388] sm:$0xff] }
  0xcd   : > { %883 = vmatprep.subr.bf16.mxu0 %v824_v56  ;;  %2247 = vmatpush3.bf16.msra.mxu1 %v798_v62  ;;  %v807_v56 = vpack.c.bf16 %v684_v45, %v681_v43  ;;  %v690_v62 = vld [vmem:[%s3228_s18 + $0x178] sm:$0xff]  ;;  %v832_v63 = vpack.c.bf16 %v736_v55, %v733_v54  ;;  %v759_v43 = vld [vmem:[%s3228_s18 + $0x3a0] sm:$0xff]  ;;  %v765_v50 = vld [vmem:[%s3228_s18 + $0x3d0] sm:$0xff] }
  0xce   : > { %2248 = vmatprep.subr.bf16.mxu1 %v825_v3  ;;  %v741_v3 = vld [vmem:[%s3228_s18 + $0x310] sm:$0xff]  ;;  %v762_v45 = vld [vmem:[%s3228_s18 + $0x3b8] sm:$0xff]  ;;  %v771_v58 = vld [vmem:[%s3228_s18 + $0x400] sm:$0xff] }
  0xcf   : > { %v837_v16 = vpack.c.bf16 %v744_v4, %v741_v3  ;;  %v846_v49 = vpack.c.bf16 %v762_v45, %v759_v43  ;;  %v526_v54 = vld [vmem:[%s3218_s3 + $0xd8] sm:$0xff]  ;;  %v533_v55 = vld [vmem:[%s3218_s3 + $0x110] sm:$0xff]  ;;  %v532_v2 = vld [vmem:[%s3218_s3 + $0x108] sm:$0xff] }
  0xd0   : > { %1205 = vmatmul.mubr.bf16.gmra.mrb[8].mxu1 %v3408_v7  ;;  %884 = vmatpush1.bf16.msra.mxu0 %v823_v9  ;;  %v588_v9 = vld [vmem:[%s3218_s3 + $0x2c8] sm:$0xff]  ;;  %v541_v23 = vld [vmem:[%s3218_s3 + $0x150] sm:$0xff] }
  0xd1   : > { %885 = vmatprep.subr.bf16.mxu0 %v827_v12  ;;  %1214 = vmatprep.mubr.bf16.mxu1 %v2904_v0  ;;  %v810_v12 = vpack.c.bf16 %v690_v62, %v687_v61  ;;  %v3448_v17 = vpack.c.bf16 %v588_v9, %v585_v5  ;;  %v777_v62 = vld [vmem:[%s3228_s18 + $0x430] sm:$0xff]  ;;  %v536_v3 = vld [vmem:[%s3218_s3 + $0x128] sm:$0xff]  ;;  %v786_v9 = vld [vmem:[%s3228_s18 + $0x478] sm:$0xff] }
  0xd2   : > { %2249 = vmatpush3.bf16.msra.mxu1 %v801_v20  ;;  %v505_v20 = vld [vmem:[%s3218_s3 + $0x30] sm:$0xff]  ;;  %v544_v24 = vld [vmem:[%s3218_s3 + $0x168] sm:$0xff] }
  0xd3   : > { %2250 = vmatprep.subr.bf16.mxu1 %v828_v22  ;;  %v508_v22 = vld [vmem:[%s3218_s3 + $0x48] sm:$0xff]  ;;  %v565_v45 = vld [vmem:[%s3218_s3 + $0x210] sm:$0xff] }
  0xd4   : > { %886 = vmatpush1.bf16.msra.mxu0 %v826_v25  ;;  %v515_v25 = vld [vmem:[%s3218_s3 + $0x80] sm:$0xff]  ;;  %v598_v27 = vpack.c.bf16 %v508_v22, %v505_v20 }
  0xd5   : > { %887 = vmatprep.subr.bf16.mxu0 %v830_v32  ;;  %v514_v32 = vld [vmem:[%s3218_s3 + $0x78] sm:$0xff] }
  0xd6   : > { %2251 = vmatpush3.bf16.msra.mxu1 %v804_v41  ;;  %v524_v41 = vld [vmem:[%s3218_s3 + $0xc8] sm:$0xff] }
  0xd7   : > { %2252 = vmatprep.subr.bf16.mxu1 %v831_v42  ;;  %v527_v42 = vld [vmem:[%s3218_s3 + $0xe0] sm:$0xff] }
  0xd8   : > { %1215 = vmatmul.mubr.bf16.gmra.mrb[12].mxu1 %v3430_v47  ;;  %888 = vmatpush1.bf16.msra.mxu0 %v829_v48  ;;  %v608_v48 = vpack.c.bf16 %v527_v42, %v524_v41  ;;  %v562_v41 = vld [vmem:[%s3218_s3 + $0x1f8] sm:$0xff] }
  0xd9   : > { %889 = vmatprep.subr.bf16.mxu0 %v833_v51  ;;  %1224 = vmatprep.mubr.bf16.mxu1 %v2904_v0  ;;  %v523_v51 = vld [vmem:[%s3218_s3 + $0xc0] sm:$0xff]  ;;  %v566_v42 = vld [vmem:[%s3218_s3 + $0x218] sm:$0xff] }
  0xda   : > { %2253 = vmatpush3.bf16.msra.mxu1 %v807_v56 }
  0xdb   : > { %2254 = vmatprep.subr.bf16.mxu1 %v834_v60 }
  0xdc   : > { %890 = vmatpush1.bf16.msra.mxu0 %v832_v63  ;;  %v780_v63 = vld [vmem:[%s3228_s18 + $0x448] sm:$0xff] }
  0xdd   : > { %1052 = vmatprep.subr.bf16.mxu0 %v3241_v8  ;;  %v512_v8 = vld [vmem:[%s3218_s3 + $0x68] sm:$0xff]  ;;  %v855_v4 = vpack.c.bf16 %v780_v63, %v777_v62  ;;  %v587_v62 = vld [vmem:[%s3218_s3 + $0x2c0] sm:$0xff] }
  0xde   : > { %2255 = vmatpush3.bf16.msra.mxu1 %v810_v12  ;;  %v535_v12 = vld [vmem:[%s3218_s3 + $0x120] sm:$0xff] }
  0xdf   : > { %892 = vmatmul.mubr.bf16.vlgmr.msra.gmra.mrb[0].mxu0 %v595_v14  ;;  %2376 = vmatprep.subr.bf16.mxu1 %v837_v16 }
  0xe0   : > { %1225 = vmatmul.mubr.bf16.gmra.mrb[16].mxu1 %v3448_v17  ;;  %1053 = vmatpush1.bf16.msra.mxu0 %v3246_v13  ;;  %v602_v13 = vpack.c.bf16 %v515_v25, %v512_v8  ;;  %v548_v8 = vld [vmem:[%s3218_s3 + $0x188] sm:$0xff]  ;;  %v551_v25 = vld [vmem:[%s3218_s3 + $0x1a0] sm:$0xff] }
  0xe1   : > { %901 = vmatprep.mubr.bf16.mxu0 %v599_v19  ;;  %1234 = vmatprep.mubr.bf16.mxu1 %v2904_v0 }
  0xe2   : > { %1054 = vmatprep.subr.bf16.mxu0 %v3252_v18  ;;  %v518_v18 = vld [vmem:[%s3218_s3 + $0x98] sm:$0xff] }
  0xe3   : > { %v605_v37 = vpack.c.bf16 %v521_v34, %v518_v18  ;;  %v554_v18 = vld [vmem:[%s3218_s3 + $0x1b8] sm:$0xff]  ;;  %v557_v34 = vld [vmem:[%s3218_s3 + $0x1d0] sm:$0xff] }
  0xe4   : > { %1055 = vmatpush1.bf16.msra.mxu0 %v3262_v26  ;;  %v601_v26 = vpack.c.bf16 %v514_v32, %v511_v30  ;;  %v547_v30 = vld [vmem:[%s3218_s3 + $0x180] sm:$0xff]  ;;  %v550_v32 = vld [vmem:[%s3218_s3 + $0x198] sm:$0xff] }
  0xe5   : > { %1056 = vmatprep.subr.bf16.mxu0 %v3267_v31  ;;  %v747_v31 = vld [vmem:[%s3228_s18 + $0x340] sm:$0xff] }
  0xe6   : > { %v840_v38 = vpack.c.bf16 %v750_v36, %v747_v31  ;;  %v623_v31 = vpack.c.bf16 %v557_v34, %v554_v18  ;;  %v553_v36 = vld [vmem:[%s3218_s3 + $0x1b0] sm:$0xff]  ;;  %v531_v34 = vld [vmem:[%s3218_s3 + $0x100] sm:$0xff] }
  0xe7   : > { %902 = vmatmul.mubr.bf16.gmra.mrb[4].mxu0 %v598_v27 }
  0xe8   : > { %1235 = vmatmul.mubr.bf16.gmra.mrb[20].mxu1 %v3461_v28  ;;  %911 = vmatprep.mubr.bf16.mxu0 %v602_v13 }
  0xe9   : > { %1277 = vmatprep.mubr.bf16.mxu1 %v3395_v53  ;;  %1057 = vmatpush1.bf16.msra.mxu0 %v3276_v39  ;;  %v753_v53 = vld [vmem:[%s3228_s18 + $0x370] sm:$0xff] }
  0xea   : > { %1058 = vmatprep.subr.bf16.mxu0 %v3282_v44  ;;  %v517_v39 = vld [vmem:[%s3218_s3 + $0x90] sm:$0xff]  ;;  %v520_v44 = vld [vmem:[%s3218_s3 + $0xa8] sm:$0xff] }
  0xed   : > { %1059 = vmatpush1.bf16.msra.mxu0 %v3291_v52  ;;  %v843_v52 = vpack.c.bf16 %v756_v40, %v753_v53  ;;  %v563_v53 = vld [vmem:[%s3218_s3 + $0x200] sm:$0xff] }
  0xee   : > { %1060 = vmatprep.subr.bf16.mxu0 %v3297_v57  ;;  %v604_v57 = vpack.c.bf16 %v520_v44, %v517_v39  ;;  %v559_v44 = vld [vmem:[%s3218_s3 + $0x1e0] sm:$0xff] }
  0xef   : > { %912 = vmatmul.mubr.bf16.gmra.mrb[8].mxu0 %v601_v26 }
  0xf0   : > { %1278 = vmatmul.mubr.bf16.vlgmr.msra.gmra.mrb[24].mxu1 %v595_v14  ;;  %921 = vmatprep.mubr.bf16.mxu0 %v605_v37  ;;  %v538_v14 = vld [vmem:[%s3218_s3 + $0x138] sm:$0xff] }
  0xf1   : > { %2377 = vmatpush3.bf16.msra.mxu1 %v837_v16  ;;  %1285 = vmatprep.mubr.bf16.mxu1 %v599_v19  ;;  %v542_v16 = vld [vmem:[%s3218_s3 + $0x158] sm:$0xff]  ;;  %v545_v19 = vld [vmem:[%s3218_s3 + $0x170] sm:$0xff]  ;;  %v613_v20 = vpack.c.bf16 %v538_v14, %v535_v12  ;;  %v504_v14 = vld [vmem:[%s3218_s3 + $0x28] sm:$0xff] }
  0xf2   : > { %2378 = vmatprep.subr.bf16.mxu1 %v840_v38  ;;  %1061 = vmatpush1.bf16.msra.mxu0 %v3305_v1  ;;  %v768_v1 = vld [vmem:[%s3228_s18 + $0x3e8] sm:$0xff]  ;;  %v617_v22 = vpack.c.bf16 %v545_v19, %v542_v16  ;;  %v501_v12 = vld [vmem:[%s3218_s3 + $0x10] sm:$0xff]  ;;  %v507_v19 = vld [vmem:[%s3218_s3 + $0x40] sm:$0xff] }
  0xf3   : > { %1062 = vmatprep.subr.bf16.mxu0 %v3311_v6  ;;  %v530_v6 = vld [vmem:[%s3218_s3 + $0xf8] sm:$0xff]  ;;  %v849_v56 = vpack.c.bf16 %v768_v1, %v765_v50  ;;  %v575_v50 = vld [vmem:[%s3218_s3 + $0x260] sm:$0xff]  ;;  %v597_v16 = vpack.c.bf16 %v504_v14, %v501_v12 }
  0xf4   : > { %v611_v60 = vpack.c.bf16 %v533_v55, %v530_v6  ;;  %v574_v6 = vld [vmem:[%s3218_s3 + $0x258] sm:$0xff] }
  0xf5   : > { %2379 = vmatpush3.bf16.msra.mxu1 %v840_v38  ;;  %v560_v38 = vld [vmem:[%s3218_s3 + $0x1e8] sm:$0xff]  ;;  %v578_v55 = vld [vmem:[%s3218_s3 + $0x278] sm:$0xff] }
  0xf6   : > { %2380 = vmatprep.subr.bf16.mxu1 %v843_v52  ;;  %1063 = vmatpush1.bf16.msra.mxu0 %v3319_v15  ;;  %v607_v15 = vpack.c.bf16 %v526_v54, %v523_v51  ;;  %v626_v39 = vpack.c.bf16 %v563_v53, %v560_v38  ;;  %v571_v54 = vld [vmem:[%s3218_s3 + $0x240] sm:$0xff] }
  0xf7   : > { %922 = vmatmul.mubr.bf16.gmra.mrb[12].mxu0 %v604_v57  ;;  %1064 = vmatprep.subr.bf16.mxu0 %v3325_v21  ;;  %v774_v21 = vld [vmem:[%s3228_s18 + $0x418] sm:$0xff]  ;;  %v543_v53 = vld [vmem:[%s3218_s3 + $0x160] sm:$0xff] }
  0xf8   : > { %1286 = vmatmul.mubr.bf16.gmra.mrb[28].mxu1 %v598_v27  ;;  %931 = vmatprep.mubr.bf16.mxu0 %v608_v48  ;;  %v852_v61 = vpack.c.bf16 %v774_v21, %v771_v58  ;;  %v616_v27 = vpack.c.bf16 %v544_v24, %v541_v23  ;;  %v577_v21 = vld [vmem:[%s3218_s3 + $0x270] sm:$0xff]  ;;  %v516_v24 = vld [vmem:[%s3218_s3 + $0x88] sm:$0xff] }
  0xf9   : > { %1293 = vmatprep.mubr.bf16.mxu1 %v602_v13  ;;  %2381 = vmatpush3.bf16.msra.mxu1 %v843_v52  ;;  %v620_v13 = vpack.c.bf16 %v551_v25, %v548_v8  ;;  %v569_v52 = vld [vmem:[%s3218_s3 + $0x230] sm:$0xff]  ;;  %v519_v25 = vld [vmem:[%s3218_s3 + $0xa0] sm:$0xff] }
  0xfa   : > { %2382 = vmatprep.subr.bf16.mxu1 %v846_v49  ;;  %1065 = vmatpush1.bf16.msra.mxu0 %v3333_v29  ;;  %v529_v29 = vld [vmem:[%s3218_s3 + $0xf0] sm:$0xff]  ;;  %v629_v43 = vpack.c.bf16 %v569_v52, %v566_v42  ;;  %v555_v52 = vld [vmem:[%s3218_s3 + $0x1c0] sm:$0xff] }
  0xfb   : > { %1066 = vmatprep.subr.bf16.mxu0 %v3339_v35  ;;  %v539_v35 = vld [vmem:[%s3218_s3 + $0x140] sm:$0xff]  ;;  %v610_v5 = vpack.c.bf16 %v532_v2, %v529_v29  ;;  %v513_v23 = vld [vmem:[%s3218_s3 + $0x70] sm:$0xff] }
  0xfc   : > { %v614_v10 = vpack.c.bf16 %v539_v35, %v536_v3  ;;  %v583_v2 = vld [vmem:[%s3218_s3 + $0x2a0] sm:$0xff]  ;;  %v586_v3 = vld [vmem:[%s3218_s3 + $0x2b8] sm:$0xff]  ;;  %v603_v8 = vpack.c.bf16 %v516_v24, %v513_v23 }
  0xfd   : > { %2383 = vmatpush3.bf16.msra.mxu1 %v846_v49  ;;  %v572_v49 = vld [vmem:[%s3218_s3 + $0x248] sm:$0xff]  ;;  %v590_v35 = vld [vmem:[%s3218_s3 + $0x2d8] sm:$0xff] }
  0xfe   : > { %2384 = vmatprep.subr.bf16.mxu1 %v849_v56  ;;  %1067 = vmatpush1.bf16.msra.mxu0 %v3349_v46  ;;  %v783_v46 = vld [vmem:[%s3228_s18 + $0x460] sm:$0xff]  ;;  %v632_v51 = vpack.c.bf16 %v575_v50, %v572_v49  ;;  %s2905_s18 = smov [#allocation9]  }
  0xff   : > { %932 = vmatmul.mubr.bf16.gmra.mrb[16].mxu0 %v607_v15  ;;  %v858_v11 = vpack.c.bf16 %v786_v9, %v783_v46  ;;  %v589_v9 = vld [vmem:[%s3218_s3 + $0x2d0] sm:$0xff]  ;;  %s2750_s29 = sshll.u32 %s2905_s18, 4  ;;  %s2751_s29 = int_to_ptr.vmem [resolvable:$false] %s2750_s29 }
 0x100   : > { %1294 = vmatmul.mubr.bf16.gmra.mrb[32].mxu1 %v601_v26  ;;  %941 = vmatprep.mubr.bf16.mxu0 %v611_v60  ;;  %v619_v26 = vpack.c.bf16 %v550_v32, %v547_v30  ;;  %v528_v30 = vld [vmem:[%s3218_s3 + $0xe8] sm:$0xff]  ;;  %p2753_p2 = scmp.lt.s32.totalorder %s3959_s8, %s2751_s29 }
 0x101   : > { %1301 = vmatprep.mubr.bf16.mxu1 %v605_v37  ;;  %2385 = vmatpush3.bf16.msra.mxu1 %v849_v56  ;;  %v556_v37 = vld [vmem:[%s3218_s3 + $0x1c8] sm:$0xff]  ;;  %v581_v56 = vld [vmem:[%s3218_s3 + $0x290] sm:$0xff] }
 0x102   : > { %2386 = vmatprep.subr.bf16.mxu1 %v852_v61  ;;  %v622_v40 = vpack.c.bf16 %v556_v37, %v553_v36  ;;  %v635_v58 = vpack.c.bf16 %v581_v56, %v578_v55  ;;  %v540_v36 = vld [vmem:[%s3218_s3 + $0x148] sm:$0xff] }
 0x105   : > { %2387 = vmatpush3.bf16.msra.mxu1 %v852_v61  ;;  %v584_v61 = vld [vmem:[%s3218_s3 + $0x2a8] sm:$0xff] }
 0x106   : > { %2388 = vmatprep.subr.bf16.mxu1 %v855_v4  ;;  %v638_v29 = vpack.c.bf16 %v587_v62, %v584_v61 }
 0x107   : > { %942 = vmatmul.mubr.bf16.gmra.mrb[20].mxu0 %v610_v5 }
 0x108   : > { %1302 = vmatmul.mubr.bf16.gmra.mrb[36].mxu1 %v604_v57  ;;  %951 = vmatprep.mubr.bf16.mxu0 %v614_v10  ;;  %v625_v57 = vpack.c.bf16 %v562_v41, %v559_v44  ;;  %v552_v44 = vld [vmem:[%s3218_s3 + $0x1a8] sm:$0xff] }
 0x109   : > { %1309 = vmatprep.mubr.bf16.mxu1 %v608_v48  ;;  %2389 = vmatpush3.bf16.msra.mxu1 %v855_v4  ;;  %v568_v48 = vld [vmem:[%s3218_s3 + $0x228] sm:$0xff]  ;;  %v593_v4 = vld [vmem:[%s3218_s3 + $0x2f0] sm:$0xff] }
 0x10a   : > { %2390 = vmatprep.subr.bf16.mxu1 %v858_v11  ;;  %v628_v1 = vpack.c.bf16 %v568_v48, %v565_v45  ;;  %v641_v46 = vpack.c.bf16 %v593_v4, %v590_v35  ;;  %v1858_v4 = vld [vmem:[%s262_s27] sm:$0x7]  ;;  %s2752_s27 = scalar_lea.vmem %s2751_s29, 24576 }
 0x10b   : > { %p2754_p9 = scmp.lt.s32.totalorder %s2752_s27, %s2746_s20 }
 0x10d   : > { %2391 = vmatpush3.bf16.msra.mxu1 %v858_v11  ;;  %p2755_p4 = por %p2754_p9, %p2753_p2 }
 0x10f   : > { %952 = vmatmul.mubr.bf16.gmra.mrb[24].mxu0 %v613_v20  ;;  %p2756_p1 = pnand %p2755_p4, %p2749_p10 }
 0x110   : > { %1310 = vmatmul.mubr.bf16.gmra.mrb[40].mxu1 %v607_v15  ;;  %961 = vmatprep.mubr.bf16.mxu0 %v617_v22  ;;  %v631_v15 = vpack.c.bf16 %v574_v6, %v571_v54 }
 0x111   : > { %1317 = vmatprep.mubr.bf16.mxu1 %v611_v60  ;;  %v580_v60 = vld [vmem:[%s3218_s3 + $0x288] sm:$0xff] }
 0x112   : > { %v634_v63 = vpack.c.bf16 %v580_v60, %v577_v21 }
 0x117   : > { %962 = vmatmul.mubr.bf16.gmra.mrb[28].mxu0 %v616_v27 }
 0x118   : > { %1318 = vmatmul.mubr.bf16.gmra.mrb[44].mxu1 %v610_v5  ;;  %971 = vmatprep.mubr.bf16.mxu0 %v620_v13  ;;  %v637_v5 = vpack.c.bf16 %v586_v3, %v583_v2 }
 0x119   : > { %1325 = vmatprep.mubr.bf16.mxu1 %v614_v10  ;;  %v592_v10 = vld [vmem:[%s3218_s3 + $0x2e8] sm:$0xff] }
 0x11a   : > { %v640_v11 = vpack.c.bf16 %v592_v10, %v589_v9 }
 0x11f   : > { %972 = vmatmul.mubr.bf16.gmra.mrb[32].mxu0 %v619_v26 }
 0x120   : > { %1326 = vmatmul.mubr.bf16.gmra.mrb[48].mxu1 %v613_v20  ;;  %981 = vmatprep.mubr.bf16.mxu0 %v623_v31  ;;  %v510_v20 = vld [vmem:[%s3218_s3 + $0x58] sm:$0xff] }
 0x121   : > { %1333 = vmatprep.mubr.bf16.mxu1 %v617_v22  ;;  %v600_v22 = vpack.c.bf16 %v510_v20, %v507_v19 }
 0x127   : > { %982 = vmatmul.mubr.bf16.gmra.mrb[36].mxu0 %v622_v40 }
 0x128   : > { %1334 = vmatmul.mubr.bf16.gmra.mrb[52].mxu1 %v616_v27  ;;  %991 = vmatprep.mubr.bf16.mxu0 %v626_v39  ;;  %v522_v27 = vld [vmem:[%s3218_s3 + $0xb8] sm:$0xff] }
 0x129   : > { %1341 = vmatprep.mubr.bf16.mxu1 %v620_v13  ;;  %v525_v13 = vld [vmem:[%s3218_s3 + $0xd0] sm:$0xff]  ;;  %v606_v32 = vpack.c.bf16 %v522_v27, %v519_v25 }
 0x12a   : > { %v609_v18 = vpack.c.bf16 %v528_v30, %v525_v13 }
 0x12f   : > { %992 = vmatmul.mubr.bf16.gmra.mrb[40].mxu0 %v625_v57 }
 0x130   : > { %1342 = vmatmul.mubr.bf16.gmra.mrb[56].mxu1 %v619_v26  ;;  %1001 = vmatprep.mubr.bf16.mxu0 %v629_v43  ;;  %v534_v26 = vld [vmem:[%s3218_s3 + $0x118] sm:$0xff] }
 0x131   : > { %1349 = vmatprep.mubr.bf16.mxu1 %v623_v31  ;;  %v537_v31 = vld [vmem:[%s3218_s3 + $0x130] sm:$0xff]  ;;  %v612_v37 = vpack.c.bf16 %v534_v26, %v531_v34 }
 0x132   : > { %v615_v38 = vpack.c.bf16 %v540_v36, %v537_v31 }
 0x137   : > { %1002 = vmatmul.mubr.bf16.gmra.mrb[44].mxu0 %v628_v1 }
 0x138   : > { %1350 = vmatmul.mubr.bf16.gmra.mrb[60].mxu1 %v622_v40  ;;  %1011 = vmatprep.mubr.bf16.mxu0 %v632_v51  ;;  %v546_v40 = vld [vmem:[%s3218_s3 + $0x178] sm:$0xff] }
 0x139   : > { %1357 = vmatprep.mubr.bf16.mxu1 %v626_v39  ;;  %v549_v39 = vld [vmem:[%s3218_s3 + $0x190] sm:$0xff]  ;;  %v618_v41 = vpack.c.bf16 %v546_v40, %v543_v53 }
 0x13a   : > { %v621_v42 = vpack.c.bf16 %v552_v44, %v549_v39 }
 0x13f   : > { %1012 = vmatmul.mubr.bf16.gmra.mrb[48].mxu0 %v631_v15 }
 0x140   : > { %1358 = vmatmul.mubr.bf16.gmra.mrb[64].mxu1 %v625_v57  ;;  %1021 = vmatprep.mubr.bf16.mxu0 %v635_v58  ;;  %v558_v57 = vld [vmem:[%s3218_s3 + $0x1d8] sm:$0xff] }
 0x141   : > { %1365 = vmatprep.mubr.bf16.mxu1 %v629_v43  ;;  %v624_v43 = vpack.c.bf16 %v558_v57, %v555_v52 }
 0x147   : > { %1022 = vmatmul.mubr.bf16.gmra.mrb[52].mxu0 %v634_v63 }
 0x148   : > { %1366 = vmatmul.mubr.bf16.gmra.mrb[68].mxu1 %v628_v1  ;;  %1031 = vmatprep.mubr.bf16.mxu0 %v638_v29 }
 0x149   : > { %1373 = vmatprep.mubr.bf16.mxu1 %v632_v51 }
 0x14f   : > { %1032 = vmatmul.mubr.bf16.gmra.mrb[56].mxu0 %v637_v5 }
 0x150   : > { %1374 = vmatmul.mubr.bf16.gmra.mrb[72].mxu1 %v631_v15  ;;  %1041 = vmatprep.mubr.bf16.mxu0 %v641_v46 }
 0x151   : > { %1381 = vmatprep.mubr.bf16.mxu1 %v635_v58 }
 0x157   : > { %1042 = vmatmul.mubr.bf16.gmra.mrb[60].mxu0 %v640_v11 }
 0x158   : > { %1382 = vmatmul.mubr.bf16.gmra.mrb[76].mxu1 %v634_v63  ;;  %1084 = vmatprep.mubr.bf16.mxu0 %v2904_v0 }
 0x159   : > { %1389 = vmatprep.mubr.bf16.mxu1 %v638_v29 }
 0x15f   : > { %1085 = vmatmul.mubr.bf16.vlgmr.msra.gmra.mrb[0].mxu0 %v597_v16 }
 0x160   : > { %1390 = vmatmul.mubr.bf16.gmra.mrb[80].mxu1 %v637_v5  ;;  %1094 = vmatprep.mubr.bf16.mxu0 %v2904_v0 }
 0x161   : > { %1397 = vmatprep.mubr.bf16.mxu1 %v641_v46 }
 0x167   : > { %1095 = vmatmul.mubr.bf16.gmra.mrb[4].mxu0 %v600_v22 }
 0x168   : > { %1398 = vmatmul.mubr.bf16.gmra.mrb[84].mxu1 %v640_v11  ;;  %1104 = vmatprep.mubr.bf16.mxu0 %v2904_v0 }
 0x169   : > { %2392 = vmatprep.mubr.bf16.mxu1 %v597_v16 }
 0x16f   : > { %1105 = vmatmul.mubr.bf16.gmra.mrb[8].mxu0 %v603_v8 }
 0x170   : > { %2393 = vmatmul.mubr.bf16.vlgmr.msra.gmra.mrb[88].mxu1 %v600_v22  ;;  %1114 = vmatprep.mubr.bf16.mxu0 %v2904_v0 }
 0x171   : > { %2396 = vmatprep.mubr.bf16.mxu1 %v603_v8 }
 0x177   : > { %1115 = vmatmul.mubr.bf16.gmra.mrb[12].mxu0 %v606_v32 }
 0x178   : > { %2397 = vmatmul.mubr.bf16.gmra.mrb[92].mxu1 %v606_v32  ;;  %1124 = vmatprep.mubr.bf16.mxu0 %v2904_v0 }
 0x179   : > { %2400 = vmatprep.mubr.bf16.mxu1 %v609_v18 }
 0x17f   : > { %1125 = vmatmul.mubr.bf16.gmra.mrb[16].mxu0 %v609_v18 }
 0x180   : > { %2401 = vmatmul.mubr.bf16.gmra.mrb[96].mxu1 %v612_v37  ;;  %1134 = vmatprep.mubr.bf16.mxu0 %v2904_v0 }
 0x181   : > { %2404 = vmatprep.mubr.bf16.mxu1 %v615_v38 }
 0x187   : > { %1135 = vmatmul.mubr.bf16.gmra.mrb[20].mxu0 %v612_v37 }
 0x188   : > { %2405 = vmatmul.mubr.bf16.gmra.mrb[100].mxu1 %v618_v41  ;;  %1144 = vmatprep.mubr.bf16.mxu0 %v2904_v0 }
 0x189   : > { %2408 = vmatprep.mubr.bf16.mxu1 %v621_v42 }
 0x18f   : > { %1145 = vmatmul.mubr.bf16.gmra.mrb[24].mxu0 %v615_v38 }
 0x190   : > { %2409 = vmatmul.mubr.bf16.gmra.mrb[104].mxu1 %v624_v43  ;;  %1154 = vmatprep.mubr.bf16.mxu0 %v2904_v0 }
 0x191   : > { %2412 = vmatprep.mubr.bf16.mxu1 %v3360_v59 }
 0x193   : > { %v3575_v45 = vpop.f32.mrb[0].mxu1 }
 0x194   : > { %v3577_v48 = vpop.f32.mrb[1].mxu1 }
 0x195   : > { %v3579_v49 = vpop.f32.mrb[2].mxu1 }
 0x196   : > { %v3581_v50 = vpop.f32.mrb[3].mxu1 }
 0x197   : > { %1155 = vmatmul.mubr.bf16.gmra.mrb[28].mxu0 %v618_v41 }
 0x198   : > { %2413 = vmatmul.mubr.bf16.gmra.mrb[108].mxu1 %v3383_v33  ;;  %1164 = vmatprep.mubr.bf16.mxu0 %v2904_v0 }
 0x199   : > { %2416 = vmatprep.mubr.bf16.mxu1 %v3408_v7 }
 0x19b   : > { %v3586_v1 = vpop.f32.mrb[4].mxu1 }
 0x19c   : > { %v3588_v51 = vpop.f32.mrb[5].mxu1 }
 0x19d   : > { %v3590_v59 = vpop.f32.mrb[6].mxu1 }
 0x19e   : > { %v3592_v54 = vpop.f32.mrb[7].mxu1 }
 0x19f   : > { %1165 = vmatmul.mubr.bf16.gmra.mrb[32].mxu0 %v621_v42 }
 0x1a0   : > { %2417 = vmatmul.mubr.bf16.gmra.mrb[112].mxu1 %v3430_v47  ;;  %1174 = vmatprep.mubr.bf16.mxu0 %v2904_v0 }
 0x1a1   : > { %2420 = vmatprep.mubr.bf16.mxu1 %v3448_v17 }
 0x1a3   : > { %v3597_v33 = vpop.f32.mrb[8].mxu1 }
 0x1a4   : > { %v3599_v6 = vpop.f32.mrb[9].mxu1 }
 0x1a5   : > { %v3601_v7 = vpop.f32.mrb[10].mxu1 }
 0x1a6   : > { %v3603_v55 = vpop.f32.mrb[11].mxu1 }
 0x1a7   : > { %1175 = vmatmul.mubr.bf16.gmra.mrb[36].mxu0 %v624_v43 }
 0x1a8   : > { %2421 = vmatmul.mubr.bf16.gmra.mrb[116].mxu1 %v3461_v28  ;;  %v1860_v28 = vlaneseq }
 0x1aa   : > { %v1861_v2 = vshrl.u32 %v1860_v28, 7 }
 0x1ab   : > { %v3606_v56 = vpop.f32.mrb[12].mxu1 }
 0x1ac   : > { %v3608_v15 = vpop.f32.mrb[13].mxu1  ;;  %v1870_v3 = vsub.s32 2, %v1861_v2 }
 0x1ad   : > { %v3610_v47 = vpop.f32.mrb[14].mxu1 }
 0x1ae   : > { %v3612_v0 = vpop.f32.mrb[15].mxu1  ;;  %v3632_v46 = vrot.slane %v1858_v4, %v1870_v3 }
 0x1b3   : > { %v3614_v17 = vpop.f32.mrb[16].mxu1 }
 0x1b4   : > { %v3616_v58 = vpop.f32.mrb[17].mxu1 }
 0x1b5   : > { %v3618_v21 = vpop.f32.mrb[18].mxu1 }
 0x1b6   : > { %v3620_v60 = vpop.f32.mrb[19].mxu1 }
 0x1bb   : > { %v3622_v61 = vpop.f32.mrb[20].mxu1 }
 0x1bc   : > { %v3624_v62 = vpop.f32.mrb[21].mxu1 }
 0x1bd   : > { %v3628_v63 = vpop.f32.mrb[22].mxu1 }
 0x1be   : > { %v3630_v29 = vpop.f32.mrb[23].mxu1 }
 0x1c3   : > { %v2256_v35 = vpop.f32.mrb[24].mxu1 }
 0x1c4   : > { %v2257_v5 = vpop.f32.mrb[25].mxu1 }
 0x1c5   : > { %v3634_v9 = vadd.f32 %v2257_v5, %v2256_v35  ;;  %v2259_v10 = vpop.f32.mrb[26].mxu1 }
 0x1c6   : > { %v2260_v11 = vpop.f32.mrb[27].mxu1 }
 0x1c7   : > { %v3636_v12 = vadd.f32 %v2260_v11, %v2259_v10 }
 0x1cb   : > { %v2262_v14 = vpop.f32.mrb[28].mxu1 }
 0x1cc   : > { %v2263_v16 = vpop.f32.mrb[29].mxu1 }
 0x1cd   : > { %v3638_v19 = vadd.f32 %v2263_v16, %v2262_v14  ;;  %v2265_v20 = vpop.f32.mrb[30].mxu1 }
 0x1ce   : > { %v2266_v22 = vpop.f32.mrb[31].mxu1 }
 0x1cf   : > { %v3640_v23 = vadd.f32 %v2266_v22, %v2265_v20 }
 0x1d3   : > { %v2268_v24 = vpop.f32.mrb[32].mxu1 }
 0x1d4   : > { %v2269_v8 = vpop.f32.mrb[33].mxu1 }
 0x1d5   : > { %v3642_v25 = vadd.f32 %v2269_v8, %v2268_v24  ;;  %v2271_v27 = vpop.f32.mrb[34].mxu1  ;;  %v1862_v8 = vsub.s32 0, %v1861_v2 }
 0x1d6   : > { %v2272_v13 = vpop.f32.mrb[35].mxu1 }
 0x1d7   : > { %v3644_v30 = vadd.f32 %v2272_v13, %v2271_v27  ;;  %v1866_v13 = vsub.s32 1, %v1861_v2 }
 0x1db   : > { %v2274_v32 = vpop.f32.mrb[36].mxu1 }
 0x1dc   : > { %v2275_v18 = vpop.f32.mrb[37].mxu1 }
 0x1dd   : > { %v3646_v34 = vadd.f32 %v2275_v18, %v2274_v32  ;;  %v2277_v26 = vpop.f32.mrb[38].mxu1  ;;  %v3669_v18 = vrot.slane %v1858_v4, %v1862_v8 }
 0x1de   : > { %v2278_v31 = vpop.f32.mrb[39].mxu1 }
 0x1df   : > { %v3648_v36 = vadd.f32 %v2278_v31, %v2277_v26  ;;  %v3671_v31 = vrot.slane %v1858_v4, %v1866_v13 }
 0x1e3   : > { %v2280_v37 = vpop.f32.mrb[40].mxu1 }
 0x1e4   : > { %v2281_v38 = vpop.f32.mrb[41].mxu1 }
 0x1e5   : > { %v3650_v53 = vadd.f32 %v2281_v38, %v2280_v37  ;;  %v2283_v40 = vpop.f32.mrb[42].mxu1 }
 0x1e6   : > { %v2284_v39 = vpop.f32.mrb[43].mxu1 }
 0x1e7   : > { %v3652_v44 = vadd.f32 %v2284_v39, %v2283_v40 }
 0x1eb   : > { %v2286_v41 = vpop.f32.mrb[44].mxu1 }
 0x1ec   : > { %v2287_v42 = vpop.f32.mrb[45].mxu1 }
 0x1ed   : > { %v3654_v52 = vadd.f32 %v2287_v42, %v2286_v41  ;;  %v2289_v57 = vpop.f32.mrb[46].mxu1 }
 0x1ee   : > { %v2290_v43 = vpop.f32.mrb[47].mxu1 }
 0x1ef   : > { %v3656_v28 = vadd.f32 %v2290_v43, %v2289_v57 }
 0x1f3   : > { %v2292_v3 = vpop.f32.mrb[48].mxu1 }
 0x1f4   : > { %v2293_v35 = vpop.f32.mrb[49].mxu1 }
 0x1f5   : > { %v3658_v5 = vadd.f32 %v2293_v35, %v2292_v3  ;;  %v2295_v10 = vpop.f32.mrb[50].mxu1 }
 0x1f6   : > { %v2296_v11 = vpop.f32.mrb[51].mxu1 }
 0x1f7   : > { %v3660_v14 = vadd.f32 %v2296_v11, %v2295_v10 }
 0x1fb   : > { %v2298_v16 = vpop.f32.mrb[52].mxu1 }
 0x1fc   : > { %v2299_v20 = vpop.f32.mrb[53].mxu1 }
 0x1fd   : > { %v3662_v22 = vadd.f32 %v2299_v20, %v2298_v16  ;;  %v2301_v24 = vpop.f32.mrb[54].mxu1 }
 0x1fe   : > { %v2302_v27 = vpop.f32.mrb[55].mxu1 }
 0x1ff   : > { %v3665_v32 = vadd.f32 %v2302_v27, %v2301_v24 }
 0x202   : > { %v993_v26 = vpop.f32.mrb[40].mxu0 }
 0x203   : > { %v1187_v37 = vadd.f32 %v3575_v45, %v993_v26  ;;  %v2304_v38 = vpop.f32.mrb[56].mxu1  ;;  %v995_v40 = vpop.f32.mrb[41].mxu0 }
 0x204   : > { %v1189_v39 = vadd.f32 %v3577_v48, %v995_v40  ;;  %v2305_v41 = vpop.f32.mrb[57].mxu1  ;;  %v997_v42 = vpop.f32.mrb[42].mxu0 }
 0x205   : > { %v1935_v57 = vadd.f32 %v3669_v18, %v1187_v37  ;;  %v3676_v2 = vadd.f32 %v2305_v41, %v2304_v38  ;;  %v1191_v43 = vadd.f32 %v3579_v49, %v997_v42  ;;  %v2307_v3 = vpop.f32.mrb[58].mxu1  ;;  %v999_v35 = vpop.f32.mrb[43].mxu0 }
 0x206   : > { %v1936_v10 = vadd.f32 %v3671_v31, %v1189_v39  ;;  %v1193_v4 = vadd.f32 %v3581_v50, %v999_v35  ;;  %v2308_v11 = vpop.f32.mrb[59].mxu1 }
 0x207   : > { %2031 = vst [vmem:[%s3681_s6 + $0x1e0] sm:$0xff] %v1935_v57  ;;  %v1938_v45 = vadd.f32 %v3669_v18, %v1191_v43  ;;  %v3685_v48 = vadd.f32 %v2308_v11, %v2307_v3 }
 0x208   : > { %2032 = vst [vmem:[%s3681_s6 + $0x1e8] sm:$0xff] %v1936_v10  ;;  %v1939_v49 = vadd.f32 %v3671_v31, %v1193_v4 }
 0x209   : > { %2034 = vst [vmem:[%s3681_s6 + $0x1f8] sm:$0xff] %v1938_v45 }
 0x20a   : > { %2035 = vst [vmem:[%s3681_s6 + $0x200] sm:$0xff] %v1939_v49  ;;  %v1003_v16 = vpop.f32.mrb[44].mxu0 }
 0x20b   : > { %v1197_v50 = vadd.f32 %v3586_v1, %v1003_v16  ;;  %v2310_v20 = vpop.f32.mrb[60].mxu1  ;;  %v1005_v24 = vpop.f32.mrb[45].mxu0 }
 0x20c   : > { %v1199_v8 = vadd.f32 %v3588_v51, %v1005_v24  ;;  %v2311_v27 = vpop.f32.mrb[61].mxu1  ;;  %v1007_v13 = vpop.f32.mrb[46].mxu0 }
 0x20d   : > { %v1941_v26 = vadd.f32 %v3669_v18, %v1197_v50  ;;  %v3694_v37 = vadd.f32 %v2311_v27, %v2310_v20  ;;  %v1201_v38 = vadd.f32 %v3590_v59, %v1007_v13  ;;  %v2313_v40 = vpop.f32.mrb[62].mxu1  ;;  %v1009_v39 = vpop.f32.mrb[47].mxu0 }
 0x20e   : > { %v1942_v41 = vadd.f32 %v3671_v31, %v1199_v8  ;;  %v1203_v1 = vadd.f32 %v3592_v54, %v1009_v39  ;;  %v2314_v42 = vpop.f32.mrb[63].mxu1 }
 0x20f   : > { %2037 = vst [vmem:[%s3681_s6 + $0x210] sm:$0xff] %v1941_v26  ;;  %v1944_v51 = vadd.f32 %v3669_v18, %v1201_v38  ;;  %v3701_v57 = vadd.f32 %v2314_v42, %v2313_v40 }
 0x210   : > { %2038 = vst [vmem:[%s3681_s6 + $0x218] sm:$0xff] %v1942_v41  ;;  %v1945_v43 = vadd.f32 %v3671_v31, %v1203_v1 }
 0x211   : > { %2040 = vst [vmem:[%s3681_s6 + $0x228] sm:$0xff] %v1944_v51 }
 0x212   : > { %2041 = vst [vmem:[%s3681_s6 + $0x230] sm:$0xff] %v1945_v43  ;;  %v1013_v3 = vpop.f32.mrb[48].mxu0 }
 0x213   : > { %v1207_v59 = vadd.f32 %v3597_v33, %v1013_v3  ;;  %v2316_v35 = vpop.f32.mrb[64].mxu1  ;;  %v1015_v10 = vpop.f32.mrb[49].mxu0 }
 0x214   : > { %v1209_v54 = vadd.f32 %v3599_v6, %v1015_v10  ;;  %v2317_v4 = vpop.f32.mrb[65].mxu1  ;;  %v1017_v11 = vpop.f32.mrb[50].mxu0 }
 0x215   : > { %v1947_v45 = vadd.f32 %v3669_v18, %v1207_v59  ;;  %v3710_v49 = vadd.f32 %v2317_v4, %v2316_v35  ;;  %v1211_v16 = vadd.f32 %v3601_v7, %v1017_v11  ;;  %v2319_v50 = vpop.f32.mrb[66].mxu1  ;;  %v1019_v20 = vpop.f32.mrb[51].mxu0 }
 0x216   : > { %v1948_v24 = vadd.f32 %v3671_v31, %v1209_v54  ;;  %v1213_v33 = vadd.f32 %v3603_v55, %v1019_v20  ;;  %v2320_v8 = vpop.f32.mrb[67].mxu1 }
 0x217   : > { %2043 = vst [vmem:[%s3681_s6 + $0x240] sm:$0xff] %v1947_v45  ;;  %v1950_v6 = vadd.f32 %v3669_v18, %v1211_v16  ;;  %v3717_v27 = vadd.f32 %v2320_v8, %v2319_v50 }
 0x218   : > { %2044 = vst [vmem:[%s3681_s6 + $0x248] sm:$0xff] %v1948_v24  ;;  %v1951_v13 = vadd.f32 %v3671_v31, %v1213_v33 }
 0x219   : > { %2046 = vst [vmem:[%s3681_s6 + $0x258] sm:$0xff] %v1950_v6 }
 0x21a   : > { %2047 = vst [vmem:[%s3681_s6 + $0x260] sm:$0xff] %v1951_v13  ;;  %v1023_v26 = vpop.f32.mrb[52].mxu0 }
 0x21b   : > { %v1217_v7 = vadd.f32 %v3606_v56, %v1023_v26  ;;  %v2322_v38 = vpop.f32.mrb[68].mxu1  ;;  %v1025_v40 = vpop.f32.mrb[53].mxu0 }
 0x21c   : > { %v1219_v55 = vadd.f32 %v3608_v15, %v1025_v40  ;;  %v2323_v39 = vpop.f32.mrb[69].mxu1  ;;  %v1027_v41 = vpop.f32.mrb[54].mxu0 }
 0x21d   : > { %v1953_v1 = vadd.f32 %v3669_v18, %v1217_v7  ;;  %v3726_v42 = vadd.f32 %v2323_v39, %v2322_v38  ;;  %v1221_v51 = vadd.f32 %v3610_v47, %v1027_v41  ;;  %v2325_v43 = vpop.f32.mrb[70].mxu1  ;;  %v1029_v3 = vpop.f32.mrb[55].mxu0 }
 0x21e   : > { %v1954_v59 = vadd.f32 %v3671_v31, %v1219_v55  ;;  %v1223_v56 = vadd.f32 %v3612_v0, %v1029_v3  ;;  %v2326_v35 = vpop.f32.mrb[71].mxu1 }
 0x21f   : > { %2049 = vst [vmem:[%s3681_s6 + $0x270] sm:$0xff] %v1953_v1  ;;  %v1956_v15 = vadd.f32 %v3669_v18, %v1221_v51  ;;  %v3733_v10 = vadd.f32 %v2326_v35, %v2325_v43 }
 0x220   : > { %2050 = vst [vmem:[%s3681_s6 + $0x278] sm:$0xff] %v1954_v59  ;;  %v1957_v54 = vadd.f32 %v3671_v31, %v1223_v56 }
 0x221   : > { %2052 = vst [vmem:[%s3681_s6 + $0x288] sm:$0xff] %v1956_v15 }
 0x222   : > { %2053 = vst [vmem:[%s3681_s6 + $0x290] sm:$0xff] %v1957_v54  ;;  %v1033_v4 = vpop.f32.mrb[56].mxu0 }
 0x223   : > { %v1227_v47 = vadd.f32 %v3614_v17, %v1033_v4  ;;  %v2328_v11 = vpop.f32.mrb[72].mxu1  ;;  %v1035_v45 = vpop.f32.mrb[57].mxu0 }
 0x224   : > { %v1229_v0 = vadd.f32 %v3616_v58, %v1035_v45  ;;  %v2329_v16 = vpop.f32.mrb[73].mxu1  ;;  %v1037_v50 = vpop.f32.mrb[58].mxu0 }
 0x225   : > { %v1959_v20 = vadd.f32 %v3669_v18, %v1227_v47  ;;  %v3742_v24 = vadd.f32 %v2329_v16, %v2328_v11  ;;  %v1231_v33 = vadd.f32 %v3618_v21, %v1037_v50  ;;  %v2331_v8 = vpop.f32.mrb[74].mxu1  ;;  %v1039_v6 = vpop.f32.mrb[59].mxu0 }
 0x226   : > { %v1960_v13 = vadd.f32 %v3671_v31, %v1229_v0  ;;  %v1233_v17 = vadd.f32 %v3620_v60, %v1039_v6  ;;  %v2332_v26 = vpop.f32.mrb[75].mxu1 }
 0x227   : > { %2055 = vst [vmem:[%s3681_s6 + $0x2a0] sm:$0xff] %v1959_v20  ;;  %v1962_v58 = vadd.f32 %v3669_v18, %v1231_v33  ;;  %v3749_v7 = vadd.f32 %v2332_v26, %v2331_v8 }
 0x228   : > { %2056 = vst [vmem:[%s3681_s6 + $0x2a8] sm:$0xff] %v1960_v13  ;;  %v1963_v38 = vadd.f32 %v3671_v31, %v1233_v17 }
 0x229   : > { %2058 = vst [vmem:[%s3681_s6 + $0x2b8] sm:$0xff] %v1962_v58 }
 0x22a   : > { %2059 = vst [vmem:[%s3681_s6 + $0x2c0] sm:$0xff] %v1963_v38  ;;  %v1043_v40 = vpop.f32.mrb[60].mxu0 }
 0x22b   : > { %v1237_v21 = vadd.f32 %v3622_v61, %v1043_v40  ;;  %v2334_v55 = vpop.f32.mrb[76].mxu1  ;;  %v1045_v39 = vpop.f32.mrb[61].mxu0 }
 0x22c   : > { %v1239_v60 = vadd.f32 %v3624_v62, %v1045_v39  ;;  %v2335_v41 = vpop.f32.mrb[77].mxu1  ;;  %v1047_v1 = vpop.f32.mrb[62].mxu0 }
 0x22d   : > { %v1965_v51 = vadd.f32 %v3669_v18, %v1237_v21  ;;  %v3758_v43 = vadd.f32 %v2335_v41, %v2334_v55  ;;  %v1241_v3 = vadd.f32 %v3628_v63, %v1047_v1  ;;  %v2337_v59 = vpop.f32.mrb[78].mxu1  ;;  %v1049_v56 = vpop.f32.mrb[63].mxu0 }
 0x22e   : > { %v1966_v35 = vadd.f32 %v3671_v31, %v1239_v60  ;;  %v1243_v61 = vadd.f32 %v3630_v29, %v1049_v56  ;;  %v2338_v15 = vpop.f32.mrb[79].mxu1 }
 0x22f   : > { %2061 = vst [vmem:[%s3681_s6 + $0x2d0] sm:$0xff] %v1965_v51  ;;  %v1968_v62 = vadd.f32 %v3669_v18, %v1241_v3  ;;  %v3765_v54 = vadd.f32 %v2338_v15, %v2337_v59 }
 0x230   : > { %2062 = vst [vmem:[%s3681_s6 + $0x2d8] sm:$0xff] %v1966_v35  ;;  %v1969_v4 = vadd.f32 %v3671_v31, %v1243_v61 }
 0x231   : > { %2064 = vst [vmem:[%s3681_s6 + $0x2e8] sm:$0xff] %v1968_v62 }
 0x232   : > { %2065 = vst [vmem:[%s3681_s6 + $0x2f0] sm:$0xff] %v1969_v4  ;;  %v1086_v63 = vpop.f32.mrb[0].mxu0 }
 0x233   : > { %v1875_v47 = vadd.f32 %v3669_v18, %v1086_v63  ;;  %v2340_v11 = vpop.f32.mrb[80].mxu1  ;;  %v1088_v29 = vpop.f32.mrb[1].mxu0 }
 0x234   : > { %v1876_v45 = vadd.f32 %v3671_v31, %v1088_v29  ;;  %v2341_v0 = vpop.f32.mrb[81].mxu1  ;;  %v1090_v16 = vpop.f32.mrb[2].mxu0 }
 0x235   : > { %1971 = vst [vmem:[%s3681_s6] sm:$0xff] %v1875_v47  ;;  %v3774_v50 = vadd.f32 %v2341_v0, %v2340_v11  ;;  %v1878_v20 = vadd.f32 %v3669_v18, %v1090_v16  ;;  %v2343_v33 = vpop.f32.mrb[82].mxu1  ;;  %v1092_v8 = vpop.f32.mrb[3].mxu0 }
 0x236   : > { %1972 = vst [vmem:[%s3681_s6 + $0x8] sm:$0xff] %v1876_v45  ;;  %v1879_v6 = vadd.f32 %v3671_v31, %v1092_v8  ;;  %v2344_v13 = vpop.f32.mrb[83].mxu1 }
 0x237   : > { %1974 = vst [vmem:[%s3681_s6 + $0x18] sm:$0xff] %v1878_v20  ;;  %v3780_v17 = vadd.f32 %v2344_v13, %v2343_v33 }
 0x238   : > { %1975 = vst [vmem:[%s3681_s6 + $0x20] sm:$0xff] %v1879_v6 }
 0x23a   : > { %v1096_v26 = vpop.f32.mrb[4].mxu0 }
 0x23b   : > { %v1881_v58 = vadd.f32 %v3669_v18, %v1096_v26  ;;  %v2346_v38 = vpop.f32.mrb[84].mxu1  ;;  %v1098_v40 = vpop.f32.mrb[5].mxu0 }
 0x23c   : > { %v1882_v21 = vadd.f32 %v3671_v31, %v1098_v40  ;;  %v2347_v55 = vpop.f32.mrb[85].mxu1  ;;  %v1100_v39 = vpop.f32.mrb[6].mxu0 }
 0x23d   : > { %1977 = vst [vmem:[%s3681_s6 + $0x30] sm:$0xff] %v1881_v58  ;;  %v3786_v60 = vadd.f32 %v2347_v55, %v2346_v38  ;;  %v1884_v41 = vadd.f32 %v3669_v18, %v1100_v39  ;;  %v2349_v1 = vpop.f32.mrb[86].mxu1  ;;  %v1102_v51 = vpop.f32.mrb[7].mxu0 }
 0x23e   : > { %1978 = vst [vmem:[%s3681_s6 + $0x38] sm:$0xff] %v1882_v21  ;;  %v1885_v3 = vadd.f32 %v3671_v31, %v1102_v51  ;;  %v2350_v59 = vpop.f32.mrb[87].mxu1 }
 0x23f   : > { %1980 = vst [vmem:[%s3681_s6 + $0x48] sm:$0xff] %v1884_v41  ;;  %v3792_v56 = vadd.f32 %v2350_v59, %v2349_v1 }
 0x240   : > { %1981 = vst [vmem:[%s3681_s6 + $0x50] sm:$0xff] %v1885_v3 }
 0x242   : > { %v1106_v35 = vpop.f32.mrb[8].mxu0 }
 0x243   : > { %v1887_v61 = vadd.f32 %v3669_v18, %v1106_v35  ;;  %v2394_v15 = vpop.f32.mrb[88].mxu1  ;;  %v1108_v62 = vpop.f32.mrb[9].mxu0 }
 0x244   : > { %v1449_v4 = vadd.f32 %v2394_v15, %v3638_v19  ;;  %v1888_v63 = vadd.f32 %v3671_v31, %v1108_v62  ;;  %v1440_v47 = vpop.f32.mrb[89].mxu1  ;;  %v1110_v11 = vpop.f32.mrb[10].mxu0 }
 0x245   : > { %1983 = vst [vmem:[%s3681_s6 + $0x60] sm:$0xff] %v1887_v61  ;;  %v1441_v29 = vadd.f32 %v3634_v9, %v1440_v47  ;;  %v1890_v45 = vadd.f32 %v3669_v18, %v1110_v11  ;;  %v2395_v0 = vpop.f32.mrb[90].mxu1  ;;  %v1112_v16 = vpop.f32.mrb[11].mxu0 }
 0x246   : > { %v1883_v20 = vadd.f32 %v3632_v46, %v1449_v4  ;;  %1984 = vst [vmem:[%s3681_s6 + $0x68] sm:$0xff] %v1888_v63  ;;  %v1452_v19 = vadd.f32 %v2395_v0, %v3640_v23  ;;  %v1891_v33 = vadd.f32 %v3671_v31, %v1112_v16  ;;  %v1443_v8 = vpop.f32.mrb[91].mxu1 }
 0x247   : > { %v1877_v6 = vadd.f32 %v3632_v46, %v1441_v29  ;;  %1986 = vst [vmem:[%s3681_s6 + $0x78] sm:$0xff] %v1890_v45  ;;  %v1444_v13 = vadd.f32 %v3636_v12, %v1443_v8 }
 0x248   : > { %1979 = vst [vmem:[%s3681_s6 + $0x40] sm:$0xff] %v1883_v20  ;;  %v1886_v9 = vadd.f32 %v3632_v46, %v1452_v19  ;;  %1987 = vst [vmem:[%s3681_s6 + $0x80] sm:$0xff] %v1891_v33 }
 0x249   : > { %1973 = vst [vmem:[%s3681_s6 + $0x10] sm:$0xff] %v1877_v6  ;;  %v1880_v26 = vadd.f32 %v3632_v46, %v1444_v13 }
 0x24a   : > { %1982 = vst [vmem:[%s3681_s6 + $0x58] sm:$0xff] %v1886_v9  ;;  %v1116_v58 = vpop.f32.mrb[12].mxu0 }
 0x24b   : > { %1976 = vst [vmem:[%s3681_s6 + $0x28] sm:$0xff] %v1880_v26  ;;  %v1893_v23 = vadd.f32 %v3669_v18, %v1116_v58  ;;  %v2398_v38 = vpop.f32.mrb[92].mxu1  ;;  %v1118_v40 = vpop.f32.mrb[13].mxu0 }
 0x24c   : > { %v1465_v21 = vadd.f32 %v2398_v38, %v3646_v34  ;;  %v1894_v12 = vadd.f32 %v3671_v31, %v1118_v40  ;;  %v1456_v55 = vpop.f32.mrb[93].mxu1  ;;  %v1120_v39 = vpop.f32.mrb[14].mxu0 }
 0x24d   : > { %1989 = vst [vmem:[%s3681_s6 + $0x90] sm:$0xff] %v1893_v23  ;;  %v1457_v41 = vadd.f32 %v3642_v25, %v1456_v55  ;;  %v1896_v1 = vadd.f32 %v3669_v18, %v1120_v39  ;;  %v2399_v51 = vpop.f32.mrb[94].mxu1  ;;  %v1122_v3 = vpop.f32.mrb[15].mxu0 }
 0x24e   : > { %v1895_v59 = vadd.f32 %v3632_v46, %v1465_v21  ;;  %1990 = vst [vmem:[%s3681_s6 + $0x98] sm:$0xff] %v1894_v12  ;;  %v1468_v34 = vadd.f32 %v2399_v51, %v3648_v36  ;;  %v1897_v35 = vadd.f32 %v3671_v31, %v1122_v3  ;;  %v1459_v61 = vpop.f32.mrb[95].mxu1 }
 0x24f   : > { %v1889_v15 = vadd.f32 %v3632_v46, %v1457_v41  ;;  %1992 = vst [vmem:[%s3681_s6 + $0xa8] sm:$0xff] %v1896_v1  ;;  %v1460_v62 = vadd.f32 %v3644_v30, %v1459_v61 }
 0x250   : > { %1991 = vst [vmem:[%s3681_s6 + $0xa0] sm:$0xff] %v1895_v59  ;;  %v1898_v25 = vadd.f32 %v3632_v46, %v1468_v34  ;;  %1993 = vst [vmem:[%s3681_s6 + $0xb0] sm:$0xff] %v1897_v35 }
 0x251   : > { %1985 = vst [vmem:[%s3681_s6 + $0x70] sm:$0xff] %v1889_v15  ;;  %v1892_v4 = vadd.f32 %v3632_v46, %v1460_v62 }
 0x252   : > { %1994 = vst [vmem:[%s3681_s6 + $0xb8] sm:$0xff] %v1898_v25  ;;  %v1126_v63 = vpop.f32.mrb[16].mxu0 }
 0x253   : > { %1988 = vst [vmem:[%s3681_s6 + $0x88] sm:$0xff] %v1892_v4  ;;  %v1899_v36 = vadd.f32 %v3669_v18, %v1126_v63  ;;  %v2402_v47 = vpop.f32.mrb[96].mxu1  ;;  %v1128_v11 = vpop.f32.mrb[17].mxu0 }
 0x254   : > { %v1481_v29 = vadd.f32 %v2402_v47, %v3654_v52  ;;  %v1900_v30 = vadd.f32 %v3671_v31, %v1128_v11  ;;  %v1472_v45 = vpop.f32.mrb[97].mxu1  ;;  %v1130_v0 = vpop.f32.mrb[18].mxu0 }
 0x255   : > { %1995 = vst [vmem:[%s3681_s6 + $0xc0] sm:$0xff] %v1899_v36  ;;  %v1473_v16 = vadd.f32 %v3650_v53, %v1472_v45  ;;  %v1902_v20 = vadd.f32 %v3669_v18, %v1130_v0  ;;  %v2403_v19 = vpop.f32.mrb[98].mxu1  ;;  %v1132_v33 = vpop.f32.mrb[19].mxu0 }
 0x256   : > { %v1907_v8 = vadd.f32 %v3632_v46, %v1481_v29  ;;  %1996 = vst [vmem:[%s3681_s6 + $0xc8] sm:$0xff] %v1900_v30  ;;  %v1484_v52 = vadd.f32 %v2403_v19, %v3656_v28  ;;  %v1903_v6 = vadd.f32 %v3671_v31, %v1132_v33  ;;  %v1475_v13 = vpop.f32.mrb[99].mxu1 }
 0x257   : > { %v1901_v9 = vadd.f32 %v3632_v46, %v1473_v16  ;;  %1998 = vst [vmem:[%s3681_s6 + $0xd8] sm:$0xff] %v1902_v20  ;;  %v1476_v26 = vadd.f32 %v3652_v44, %v1475_v13 }
 0x258   : > { %2003 = vst [vmem:[%s3681_s6 + $0x100] sm:$0xff] %v1907_v8  ;;  %v1910_v53 = vadd.f32 %v3632_v46, %v1484_v52  ;;  %1999 = vst [vmem:[%s3681_s6 + $0xe0] sm:$0xff] %v1903_v6 }
 0x259   : > { %1997 = vst [vmem:[%s3681_s6 + $0xd0] sm:$0xff] %v1901_v9  ;;  %v1904_v58 = vadd.f32 %v3632_v46, %v1476_v26 }
 0x25a   : > { %2006 = vst [vmem:[%s3681_s6 + $0x118] sm:$0xff] %v1910_v53  ;;  %v1136_v23 = vpop.f32.mrb[20].mxu0 }
 0x25b   : > { %2000 = vst [vmem:[%s3681_s6 + $0xe8] sm:$0xff] %v1904_v58  ;;  %v1905_v28 = vadd.f32 %v3669_v18, %v1136_v23  ;;  %v2406_v38 = vpop.f32.mrb[100].mxu1  ;;  %v1138_v40 = vpop.f32.mrb[21].mxu0 }
 0x25c   : > { %v1497_v21 = vadd.f32 %v2406_v38, %v3662_v22  ;;  %v1906_v44 = vadd.f32 %v3671_v31, %v1138_v40  ;;  %v1488_v12 = vpop.f32.mrb[101].mxu1  ;;  %v1140_v55 = vpop.f32.mrb[22].mxu0 }
 0x25d   : > { %2001 = vst [vmem:[%s3681_s6 + $0xf0] sm:$0xff] %v1905_v28  ;;  %v1489_v39 = vadd.f32 %v3658_v5, %v1488_v12  ;;  %v1908_v41 = vadd.f32 %v3669_v18, %v1140_v55  ;;  %v2407_v1 = vpop.f32.mrb[102].mxu1  ;;  %v1142_v51 = vpop.f32.mrb[23].mxu0 }
 0x25e   : > { %v1919_v3 = vadd.f32 %v3632_v46, %v1497_v21  ;;  %2002 = vst [vmem:[%s3681_s6 + $0xf8] sm:$0xff] %v1906_v44  ;;  %v1500_v22 = vadd.f32 %v2407_v1, %v3665_v32  ;;  %v1909_v59 = vadd.f32 %v3671_v31, %v1142_v51  ;;  %v1491_v34 = vpop.f32.mrb[103].mxu1 }
 0x25f   : > { %v1913_v35 = vadd.f32 %v3632_v46, %v1489_v39  ;;  %2004 = vst [vmem:[%s3681_s6 + $0x108] sm:$0xff] %v1908_v41  ;;  %v1492_v61 = vadd.f32 %v3660_v14, %v1491_v34 }
 0x260   : > { %2015 = vst [vmem:[%s3681_s6 + $0x160] sm:$0xff] %v1919_v3  ;;  %v1922_v5 = vadd.f32 %v3632_v46, %v1500_v22  ;;  %2005 = vst [vmem:[%s3681_s6 + $0x110] sm:$0xff] %v1909_v59 }
 0x261   : > { %2009 = vst [vmem:[%s3681_s6 + $0x130] sm:$0xff] %v1913_v35  ;;  %v1916_v15 = vadd.f32 %v3632_v46, %v1492_v61 }
 0x262   : > { %2018 = vst [vmem:[%s3681_s6 + $0x178] sm:$0xff] %v1922_v5  ;;  %v1146_v62 = vpop.f32.mrb[24].mxu0 }
 0x263   : > { %2012 = vst [vmem:[%s3681_s6 + $0x148] sm:$0xff] %v1916_v15  ;;  %v1911_v32 = vadd.f32 %v3669_v18, %v1146_v62  ;;  %v2410_v25 = vpop.f32.mrb[104].mxu1  ;;  %v1148_v4 = vpop.f32.mrb[25].mxu0 }
 0x264   : > { %v1513_v63 = vadd.f32 %v2410_v25, %v3694_v37  ;;  %v1912_v14 = vadd.f32 %v3671_v31, %v1148_v4  ;;  %v1504_v36 = vpop.f32.mrb[105].mxu1  ;;  %v1150_v47 = vpop.f32.mrb[26].mxu0 }
 0x265   : > { %2007 = vst [vmem:[%s3681_s6 + $0x120] sm:$0xff] %v1911_v32  ;;  %v1505_v11 = vadd.f32 %v3676_v2, %v1504_v36  ;;  %v1914_v29 = vadd.f32 %v3669_v18, %v1150_v47  ;;  %v2411_v30 = vpop.f32.mrb[106].mxu1  ;;  %v1152_v45 = vpop.f32.mrb[27].mxu0 }
 0x266   : > { %v1931_v0 = vadd.f32 %v3632_v46, %v1513_v63  ;;  %2008 = vst [vmem:[%s3681_s6 + $0x128] sm:$0xff] %v1912_v14  ;;  %v1516_v37 = vadd.f32 %v2411_v30, %v3701_v57  ;;  %v1915_v16 = vadd.f32 %v3671_v31, %v1152_v45  ;;  %v1507_v20 = vpop.f32.mrb[107].mxu1 }
 0x267   : > { %v1925_v19 = vadd.f32 %v3632_v46, %v1505_v11  ;;  %2010 = vst [vmem:[%s3681_s6 + $0x138] sm:$0xff] %v1914_v29  ;;  %v1508_v33 = vadd.f32 %v3685_v48, %v1507_v20 }
 0x268   : > { %2027 = vst [vmem:[%s3681_s6 + $0x1c0] sm:$0xff] %v1931_v0  ;;  %v1934_v2 = vadd.f32 %v3632_v46, %v1516_v37  ;;  %2011 = vst [vmem:[%s3681_s6 + $0x140] sm:$0xff] %v1915_v16 }
 0x269   : > { %2021 = vst [vmem:[%s3681_s6 + $0x190] sm:$0xff] %v1925_v19  ;;  %v1928_v8 = vadd.f32 %v3632_v46, %v1508_v33 }
 0x26a   : > { %2030 = vst [vmem:[%s3681_s6 + $0x1d8] sm:$0xff] %v1934_v2  ;;  %v1156_v52 = vpop.f32.mrb[28].mxu0 }
 0x26b   : > { %2024 = vst [vmem:[%s3681_s6 + $0x1a8] sm:$0xff] %v1928_v8  ;;  %v1917_v57 = vadd.f32 %v3669_v18, %v1156_v52  ;;  %v2414_v6 = vpop.f32.mrb[108].mxu1  ;;  %v1158_v13 = vpop.f32.mrb[29].mxu0 }
 0x26c   : > { %v1529_v9 = vadd.f32 %v2414_v6, %v3726_v42  ;;  %v1918_v48 = vadd.f32 %v3671_v31, %v1158_v13  ;;  %v1520_v26 = vpop.f32.mrb[109].mxu1  ;;  %v1160_v53 = vpop.f32.mrb[30].mxu0 }
 0x26d   : > { %2013 = vst [vmem:[%s3681_s6 + $0x150] sm:$0xff] %v1917_v57  ;;  %v1521_v58 = vadd.f32 %v3710_v49, %v1520_v26  ;;  %v1920_v23 = vadd.f32 %v3669_v18, %v1160_v53  ;;  %v2415_v28 = vpop.f32.mrb[110].mxu1  ;;  %v1162_v38 = vpop.f32.mrb[31].mxu0 }
 0x26e   : > { %v1943_v40 = vadd.f32 %v3632_v46, %v1529_v9  ;;  %2014 = vst [vmem:[%s3681_s6 + $0x158] sm:$0xff] %v1918_v48  ;;  %v1532_v42 = vadd.f32 %v2415_v28, %v3733_v10  ;;  %v1921_v21 = vadd.f32 %v3671_v31, %v1162_v38  ;;  %v1523_v44 = vpop.f32.mrb[111].mxu1 }
 0x26f   : > { %v1937_v12 = vadd.f32 %v3632_v46, %v1521_v58  ;;  %2016 = vst [vmem:[%s3681_s6 + $0x168] sm:$0xff] %v1920_v23  ;;  %v1524_v55 = vadd.f32 %v3717_v27, %v1523_v44 }
 0x270   : > { %2039 = vst [vmem:[%s3681_s6 + $0x220] sm:$0xff] %v1943_v40  ;;  %v1946_v49 = vadd.f32 %v3632_v46, %v1532_v42  ;;  %2017 = vst [vmem:[%s3681_s6 + $0x170] sm:$0xff] %v1921_v21 }
 0x271   : > { %2033 = vst [vmem:[%s3681_s6 + $0x1f0] sm:$0xff] %v1937_v12  ;;  %v1940_v39 = vadd.f32 %v3632_v46, %v1524_v55 }
 0x272   : > { %2042 = vst [vmem:[%s3681_s6 + $0x238] sm:$0xff] %v1946_v49  ;;  %v1166_v10 = vpop.f32.mrb[32].mxu0 }
 0x273   : > { %2036 = vst [vmem:[%s3681_s6 + $0x208] sm:$0xff] %v1940_v39  ;;  %v1923_v41 = vadd.f32 %v3669_v18, %v1166_v10  ;;  %v2418_v1 = vpop.f32.mrb[112].mxu1  ;;  %v1168_v51 = vpop.f32.mrb[33].mxu0 }
 0x274   : > { %v1545_v27 = vadd.f32 %v2418_v1, %v3758_v43  ;;  %v1924_v3 = vadd.f32 %v3671_v31, %v1168_v51  ;;  %v1536_v22 = vpop.f32.mrb[113].mxu1  ;;  %v1170_v59 = vpop.f32.mrb[34].mxu0 }
 0x275   : > { %2019 = vst [vmem:[%s3681_s6 + $0x180] sm:$0xff] %v1923_v41  ;;  %v1537_v34 = vadd.f32 %v3742_v24, %v1536_v22  ;;  %v1926_v35 = vadd.f32 %v3669_v18, %v1170_v59  ;;  %v2419_v61 = vpop.f32.mrb[114].mxu1  ;;  %v1172_v5 = vpop.f32.mrb[35].mxu0 }
 0x276   : > { %v1955_v43 = vadd.f32 %v3632_v46, %v1545_v27  ;;  %2020 = vst [vmem:[%s3681_s6 + $0x188] sm:$0xff] %v1924_v3  ;;  %v1548_v15 = vadd.f32 %v2419_v61, %v3765_v54  ;;  %v1927_v62 = vadd.f32 %v3671_v31, %v1172_v5  ;;  %v1539_v32 = vpop.f32.mrb[115].mxu1 }
 0x277   : > { %v1949_v25 = vadd.f32 %v3632_v46, %v1537_v34  ;;  %2022 = vst [vmem:[%s3681_s6 + $0x198] sm:$0xff] %v1926_v35  ;;  %v1540_v24 = vadd.f32 %v3749_v7, %v1539_v32 }
 0x278   : > { %2051 = vst [vmem:[%s3681_s6 + $0x280] sm:$0xff] %v1955_v43  ;;  %v1958_v4 = vadd.f32 %v3632_v46, %v1548_v15  ;;  %2023 = vst [vmem:[%s3681_s6 + $0x1a0] sm:$0xff] %v1927_v62 }
 0x279   : > { %2045 = vst [vmem:[%s3681_s6 + $0x250] sm:$0xff] %v1949_v25  ;;  %v1952_v63 = vadd.f32 %v3632_v46, %v1540_v24 }
 0x27a   : > { %2054 = vst [vmem:[%s3681_s6 + $0x298] sm:$0xff] %v1958_v4  ;;  %v1176_v54 = vpop.f32.mrb[36].mxu0 }
 0x27b   : > { %2048 = vst [vmem:[%s3681_s6 + $0x268] sm:$0xff] %v1952_v63  ;;  %v1929_v14 = vadd.f32 %v3669_v18, %v1176_v54  ;;  %v2422_v36 = vpop.f32.mrb[116].mxu1  ;;  %v1178_v47 = vpop.f32.mrb[37].mxu0 }
 0x27c   : > { %v1561_v7 = vadd.f32 %v2422_v36, %v3786_v60  ;;  %v1930_v11 = vadd.f32 %v3671_v31, %v1178_v47  ;;  %v1552_v29 = vpop.f32.mrb[117].mxu1  ;;  %v1180_v30 = vpop.f32.mrb[38].mxu0 }
 0x27d   : > { %2025 = vst [vmem:[%s3681_s6 + $0x1b0] sm:$0xff] %v1929_v14  ;;  %v1553_v45 = vadd.f32 %v3774_v50, %v1552_v29  ;;  %v1932_v0 = vadd.f32 %v3669_v18, %v1180_v30  ;;  %v2423_v37 = vpop.f32.mrb[118].mxu1  ;;  %v1182_v16 = vpop.f32.mrb[39].mxu0 }
 0x27e   : > { %v1967_v60 = vadd.f32 %v3632_v46, %v1561_v7  ;;  %2026 = vst [vmem:[%s3681_s6 + $0x1b8] sm:$0xff] %v1930_v11  ;;  %v1564_v20 = vadd.f32 %v2423_v37, %v3792_v56  ;;  %v1933_v19 = vadd.f32 %v3671_v31, %v1182_v16  ;;  %v1555_v33 = vpop.f32.mrb[119].mxu1 }
 0x27f   : > { %v1961_v50 = vadd.f32 %v3632_v46, %v1553_v45  ;;  %2028 = vst [vmem:[%s3681_s6 + $0x1c8] sm:$0xff] %v1932_v0  ;;  %v1556_v18 = vadd.f32 %v3780_v17, %v1555_v33 }
 0x280   : > { %2063 = vst [vmem:[%s3681_s6 + $0x2e0] sm:$0xff] %v1967_v60  ;;  %v1970_v2 = vadd.f32 %v3632_v46, %v1564_v20  ;;  %2029 = vst [vmem:[%s3681_s6 + $0x1d0] sm:$0xff] %v1933_v19 }
 0x281   : > { %2057 = vst [vmem:[%s3681_s6 + $0x2b0] sm:$0xff] %v1961_v50  ;;  %v1964_v31 = vadd.f32 %v3632_v46, %v1556_v18 }
 0x282   : > { %2066 = vst [vmem:[%s3681_s6 + $0x2f8] sm:$0xff] %v1970_v2 }
 0x283   : > { %2060 = vst [vmem:[%s3681_s6 + $0x2c8] sm:$0xff] %v1964_v31 }
 0x284   : > { %2759 = shalt.err (!%p2756_p1)
}
 0x285   : > { %s2760_s11 = scalar_lea.hbm %s3954_s10, 12288  ;;  %s2764_s1 = scalar_lea.hbm %s4104_s30, 147456 }
 0x286   : > { %p2761_p0 = scmp.ne.s32.totalorder %s3954_s10, %s2760_s11  ;;  %p2765_p8 = scmp.lt.u32.totalorder %s3954_s10, %s4104_s30 }
 0x287   : > { %p2766_p5 = scmp.lt.u32.totalorder %s2764_s1, %s2760_s11  ;;  %p2768_p13 = scmp.lt.u32.totalorder %s2760_s11, %s3954_s10 }
 0x288   : > { %p2762_p3 = pnand %p2761_p0, %p4105_p12 }
 0x289   : > { %p2767_p6 = por %p2766_p5, %p2765_p8 }
 0x28a   : > { %p2763_p7 = pneg %p2762_p3 }
 0x28b   : > { %p2769_p11 = por %p2768_p13, %p2767_p6 }
 0x28d   : > { %p2770_p10 = pnand %p2769_p11, %p2763_p7 }
 0x28f   : > { %2773 = shalt.err (!%p2770_p10)
}
 0x290   : > { %s2906_s7 = smov 384   ;;  %s2907_s0 = smov 1152  }
 0x291   : > { %s2908_s21 = smov 24  }
 0x292   : > { %2519 = dma.vmem_to_hbm [thread:$0]  (%p4105_p12), %s3959_s8, 12288, %s3954_s10, %s3967_s4, %s2906_s7, %s2907_s0, %s2908_s21  }
 0x293 PF: > { %p2536_p2 = scmp.ge.s32.totalorder %s2896_s25, 2  ;;  %s2099_s3 = sand.u32 1, %s2844_s12  }
 0x294   : > { %p4106_p9 = scmp.ne.s32.totalorder %s4089_s28, 0  ;;  %s2100_s5 = scalar_lea.sflag [#allocation5], %s2099_s3 }
 0x296   : > { %p2532_p4 = pnand %p2536_p2, %p4106_p9 }
 0x298   : > { %2839 = dma.done.wait (!%p2532_p4), %s2100_s5, 12288  }
 0x299   : > { %2841 = vsyncadd (!%p2532_p4), %s2100_s5, 4294955008  ;;  %s22_s25 = sadd.s32 1, %s2896_s25   ;;  %s4108_s8 = sld [smem:[#allocation20_spill]] }
 0x29a   : > { %p3996_p1 = scmp.ge.s32.totalorder %s22_s25, 14   ;;  %s4109_s10 = sld [smem:[#allocation13_spill]] }
 0x29b   : > { %s4110_s4 = sld [smem:[#allocation21_spill]]  ;;  %s4111_s22 = sld [smem:[#allocation16_spill]] }
 0x29c   : > { %s4112_s28 = sld [smem:[#allocation17_spill]]  ;;  %s4113_s24 = sld [smem:[#allocation18_spill]] }
 0x29d   : > { %s4115_s12 = smov %s2848_s13  ;;  %s4116_s13 = smov %s2852_s14 }
 0x29e   : > { %s4117_s14 = smov %s3127_s26  ;;  %s4118_s15 = smov %s2860_s16 }
 0x29f   : > { %s4119_s16 = smov %s2864_s17  ;;  %s4120_s17 = smov %s4108_s8 }
 0x2a0   : > { %s4121_s18 = smov %s2872_s19  ;;  %s4122_s19 = smov %s4109_s10 }
 0x2a1   : > { %s4123_s20 = smov %s4110_s4  ;;  %s4124_s21 = smov %s2888_s23 }
 0x2a2   : > { %s4125_s23 = smov %s4112_s28  ;;  %21 = sbr.rel (!%p3996_p1) target bundleno = 16 (0x10), region = 109 }
 0x2a9   :  { %2105 = vsyncpa [#allocation4], 1 }
 0x2aa   :  { %2107 = vsyncpa [#allocation4 + $0x1], 1 }
 0x2ab   :  { %2108 = vsyncpa [#allocation7], 1 }
 0x2ac   :  { %2110 = vsyncpa [#allocation7 + $0x1], 1 }
 0x2ad   :  { %2111 = vsyncpa [#allocation5], 1 }
 0x2ae   :  { %2113 = vsyncpa [#allocation5 + $0x1], 1 }

</bundles_post_ra>
